<compile_context>
chip_gen: v6e
topology: v6e:2x2x1
jax: 0.10.0
libtpu: 0.0.40
codegen_flags: <defaults>
</compile_context>

<pallas_src>
import functools

import jax
import jax.numpy as jnp
from jax.experimental import pallas as pl
from jax.experimental.pallas import tpu as pltpu


# ----------------------------------------------------------------------------
# Constant-matrix builders (glue; constant-folded under jit)
# ----------------------------------------------------------------------------
def _interp_matrix(n_in, n_out):
    """Bilinear align_corners=True 1-D interpolation matrix (n_out, n_in)."""
    if n_in == 1:
        return jnp.ones((n_out, 1), jnp.float32)
    src = jnp.arange(n_out, dtype=jnp.float32) * (n_in - 1) / (n_out - 1)
    lo = jnp.clip(jnp.floor(src).astype(jnp.int32), 0, n_in - 2)
    frac = src - lo.astype(jnp.float32)
    cols = jnp.arange(n_in, dtype=jnp.int32)
    m = (jnp.where(cols[None, :] == lo[:, None], 1.0 - frac[:, None], 0.0)
         + jnp.where(cols[None, :] == (lo + 1)[:, None], frac[:, None], 0.0))
    return m.astype(jnp.float32)


def _row_interp_ext(H):
    """(2H+4, H): rows 2..2H+1 = row interp; 2 zero halo rows top & bottom."""
    return jnp.pad(_interp_matrix(H, 2 * H), ((2, 2), (0, 0)))


def _col_interp_packed(W, C):
    """(W*C, (2W+2)*C): column interp in packed (w*C + c) layout, with one
    zero halo pixel on each side baked into the output columns."""
    Uw = _interp_matrix(W, 2 * W)                       # (2W, W)
    eye = jnp.eye(C, dtype=jnp.float32)
    T = Uw.T[:, :, None, None] * eye[None, None]        # (W, 2W, C, C)
    T = jnp.pad(T, ((0, 0), (1, 1), (0, 0), (0, 0)))    # halo output pixels
    return jnp.transpose(T, (0, 2, 1, 3)).reshape(W * C, (2 * W + 2) * C)


def _band_weights(w_scaled, W_out, pad_out):
    """Block-banded conv weight matrices, one per ky tap.

    w_scaled: (3, 3, Cin, Cout) conv weights (BN scale already folded in).
    Returns (3, (W_out+2)*Cin, (W_out + 2*pad_out)*Cout) with
      M[ky][wq*Cin+ci, (w+pad_out)*Cout+co] = w_scaled[ky, wq-w, ci, co]
    for wq-w in {0,1,2}; zero elsewhere (incl. halo output columns).
    """
    _, _, Cin, Cout = w_scaled.shape
    Wp = W_out + 2
    wq = jnp.arange(Wp)[:, None]
    w = jnp.arange(W_out)[None, :]
    kx = wq - w
    valid = ((kx >= 0) & (kx <= 2))[..., None, None].astype(w_scaled.dtype)
    kx_c = jnp.clip(kx, 0, 2)
    mats = []
    for ky in range(3):
        T = w_scaled[ky][kx_c] * valid                  # (Wp, W_out, Cin, Cout)
        if pad_out:
            T = jnp.pad(T, ((0, 0), (1, 1), (0, 0), (0, 0)))
        Wo = T.shape[1]
        mats.append(jnp.transpose(T, (0, 2, 1, 3)).reshape(Wp * Cin, Wo * Cout))
    return jnp.stack(mats, axis=0)


# ----------------------------------------------------------------------------
# Fused Pallas kernel: upsample2x + conv3x3/BN/ReLU + conv3x3/BN/ReLU
# ----------------------------------------------------------------------------
def conv_up_kernel(x_ref, uh_ref, mw_ref, w1_ref, b1_ref, w2_ref, b2_ref,
                   o_ref):
    # x_ref : (1, H, W*Cin)                 packed NHWC input (one batch elem)
    # uh_ref: (2H+4, H)                     row interp (+2-row zero halo)
    # mw_ref: (W*Cin, (2W+2)*Cin)           col interp, packed (+1-px halo)
    # w1_ref: (3, (2W+2)*Cin, (2W+2)*Cout)  banded conv1 weights (BN folded)
    # b1_ref: (1, (2W+2)*Cout)              fused conv1+BN bias (0 in halo)
    # w2_ref: (3, (2W+2)*Cout, 2W*Cout)     banded conv2 weights (BN folded)
    # b2_ref: (1, 2W*Cout)                  fused conv2+BN bias
    # o_ref : (1, 2H, 2W*Cout)              packed NHWC output (lane-dense)
    f32 = jnp.float32
    H2 = o_ref.shape[1]            # 2H
    NO = o_ref.shape[2]            # 2W*Cout
    N1 = w1_ref.shape[2]           # (2W+2)*Cout

    # --- bilinear 2x upsample (separable; zero halo baked into matrices) ---
    t = jnp.dot(uh_ref[...], x_ref[0], preferred_element_type=f32)
    xp = jnp.dot(t, mw_ref[...], preferred_element_type=f32)   # (2H+4,(2W+2)Cin)

    # --- conv1 (3x3, pad=1) + BN + ReLU; output stays in conv2's padded
    #     (2H+2, (2W+2)*Cout) layout, halo rows/cols forced to zero ---------
    acc1 = jnp.zeros((H2 + 2, N1), f32)
    for ky in range(3):
        acc1 = acc1 + jnp.dot(xp[ky:ky + H2 + 2, :], w1_ref[ky],
                              preferred_element_type=f32)
    rows = jax.lax.broadcasted_iota(jnp.int32, acc1.shape, 0)
    y1 = jnp.where((rows >= 1) & (rows <= H2),
                   jnp.maximum(acc1 + b1_ref[...], 0.0), 0.0)

    # --- conv2 (3x3, pad=1) + BN + ReLU -----------------------------------
    acc2 = jnp.zeros((H2, NO), f32)
    for ky in range(3):
        acc2 = acc2 + jnp.dot(y1[ky:ky + H2, :], w2_ref[ky],
                              preferred_element_type=f32)
    o_ref[0] = jnp.maximum(acc2 + b2_ref[...], 0.0).astype(o_ref.dtype)


# ----------------------------------------------------------------------------
# ConvUp forward (PyTorch-facing NCHW I/O)
# ----------------------------------------------------------------------------
def conv_up_forward(x_nchw, params, eps=1e-5):
    B, Cin, H, W = x_nchw.shape
    Cout = params['w1'].shape[-1]
    H2, W2 = 2 * H, 2 * W

    def fold_bn(w, b, g, be, m, v):
        s = g / jnp.sqrt(v + eps)
        return (w * s).astype(jnp.float32), (be + (b - m) * s).astype(jnp.float32)

    w1s, b1f = fold_bn(params['w1'], params['b1'], params['g1'],
                       params['be1'], params['m1'], params['v1'])
    w2s, b2f = fold_bn(params['w2'], params['b2'], params['g2'],
                       params['be2'], params['m2'], params['v2'])

    uh = _row_interp_ext(H)                          # (2H+4, H)
    mw = _col_interp_packed(W, Cin)                  # (W*Cin, (W2+2)*Cin)
    w1b = _band_weights(w1s, W2, pad_out=True)       # (3,(W2+2)Cin,(W2+2)Cout)
    w2b = _band_weights(w2s, W2, pad_out=False)      # (3,(W2+2)Cout, W2*Cout)
    b1p = jnp.pad(jnp.tile(b1f, (W2,)), (Cout, Cout)).reshape(1, (W2 + 2) * Cout)
    b2p = jnp.tile(b2f, (W2,)).reshape(1, W2 * Cout)

    # NCHW -> packed (B, H, W*Cin)  (channels interleaved on the lane axis)
    x_packed = jnp.transpose(x_nchw, (0, 2, 3, 1)).reshape(B, H, W * Cin)
    x_packed = x_packed.astype(jnp.float32)

    out = pl.pallas_call(
        conv_up_kernel,
        out_shape=jax.ShapeDtypeStruct((B, H2, W2 * Cout), jnp.float32),
        grid_spec=pltpu.PrefetchScalarGridSpec(
            num_scalar_prefetch=0,
            grid=(B,),
            in_specs=[
                pl.BlockSpec((1, H, W * Cin), lambda b: (b, 0, 0)),
                pl.BlockSpec(uh.shape, lambda b: (0, 0)),
                pl.BlockSpec(mw.shape, lambda b: (0, 0)),
                pl.BlockSpec(w1b.shape, lambda b: (0, 0, 0)),
                pl.BlockSpec(b1p.shape, lambda b: (0, 0)),
                pl.BlockSpec(w2b.shape, lambda b: (0, 0, 0)),
                pl.BlockSpec(b2p.shape, lambda b: (0, 0)),
            ],
            out_specs=pl.BlockSpec((1, H2, W2 * Cout), lambda b: (b, 0, 0)),
        ),
        compiler_params=pltpu.CompilerParams(
            dimension_semantics=("parallel",)),
    )(x_packed, uh, mw, w1b, b1p, w2b, b2p)

    # packed (B, 2H, 2W*Cout) -> NCHW
    return jnp.transpose(out.reshape(B, H2, W2, Cout), (0, 3, 1, 2))


# ----------------------------------------------------------------------------
# Pure-JAX reference (for checking the fused Pallas path)
# ----------------------------------------------------------------------------
def _ref_upsample(x_nhwc):
    B, H, W, C = x_nhwc.shape
    Uh = _interp_matrix(H, 2 * H)
    Uw = _interp_matrix(W, 2 * W)
    y = jnp.einsum('oh,bhwc->bowc', Uh, x_nhwc)
    return jnp.einsum('pw,bowc->bopc', Uw, y)


def _ref_conv_bn_relu(x_nhwc, w, b, g, be, m, v, eps=1e-5):
    y = jax.lax.conv_general_dilated(
        x_nhwc, w, window_strides=(1, 1), padding='SAME',
        dimension_numbers=('NHWC', 'HWIO', 'NHWC'))
    y = y + b
    y = (y - m) / jnp.sqrt(v + eps) * g + be
    return jnp.maximum(y, 0.0)


def _ref_forward(x_nchw, params):
    x = jnp.transpose(x_nchw, (0, 2, 3, 1)).astype(jnp.float32)
    x = _ref_upsample(x)
    x = _ref_conv_bn_relu(x, params['w1'], params['b1'], params['g1'],
                          params['be1'], params['m1'], params['v1'])
    x = _ref_conv_bn_relu(x, params['w2'], params['b2'], params['g2'],
                          params['be2'], params['m2'], params['v2'])
    return jnp.transpose(x, (0, 3, 1, 2))


if __name__ == "__main__":
    in_channels, out_channels = 4, 8
    B, H, W = 2, 16, 16

    key = jax.random.PRNGKey(0)
    keys = jax.random.split(key, 9)

    x = jax.random.normal(keys[0], (B, in_channels, H, W), jnp.float32)

    params = {
        # conv1: (kh, kw, Cin, Cout)
        'w1': 0.1 * jax.random.normal(keys[1], (3, 3, in_channels, out_channels)),
        'b1': 0.05 * jax.random.normal(keys[2], (out_channels,)),
        'g1': 1.0 + 0.1 * jax.random.normal(keys[3], (out_channels,)),
        'be1': 0.1 * jax.random.normal(keys[4], (out_channels,)),
        'm1': 0.01 * jnp.arange(out_channels, dtype=jnp.float32),
        'v1': jnp.ones((out_channels,), jnp.float32),
        # conv2
        'w2': 0.1 * jax.random.normal(keys[5], (3, 3, out_channels, out_channels)),
        'b2': 0.05 * jax.random.normal(keys[6], (out_channels,)),
        'g2': 1.0 + 0.1 * jax.random.normal(keys[7], (out_channels,)),
        'be2': 0.1 * jax.random.normal(keys[8], (out_channels,)),
        'm2': 0.02 * jnp.arange(out_channels, dtype=jnp.float32),
        'v2': jnp.ones((out_channels,), jnp.float32),
    }

    fwd = jax.jit(functools.partial(conv_up_forward, params=params))
    out = fwd(x)
    jax.block_until_ready(out)

    assert out.shape == (B, out_channels, 2 * H, 2 * W), out.shape

    ref = _ref_forward(x, params)
    jax.block_until_ready(ref)
    assert jnp.allclose(out, ref, atol=1e-4, rtol=1e-4), (
        float(jnp.max(jnp.abs(out - ref))))

    print("KERNEL_OK")
</pallas_src>

<mosaic_0001>
module attributes {stable_mosaic.version = 11 : i64} {
  func.func @conv_up_kernel(%arg0: i32, %arg1: memref<1x16x64xf32, #tpu.memory_space<vmem>>, %arg2: memref<36x16xf32, #tpu.memory_space<vmem>>, %arg3: memref<64x136xf32, #tpu.memory_space<vmem>>, %arg4: memref<3x136x272xf32, #tpu.memory_space<vmem>>, %arg5: memref<1x272xf32, #tpu.memory_space<vmem>>, %arg6: memref<3x272x256xf32, #tpu.memory_space<vmem>>, %arg7: memref<1x256xf32, #tpu.memory_space<vmem>>, %arg8: memref<1x32x256xf32, #tpu.memory_space<vmem>>) attributes {dimension_semantics = [#tpu.dimension_semantics<parallel>], iteration_bounds = array<i64: 2>, scalar_prefetch = 0 : i64, scratch_operands = 0 : i64, tpu.core_type = #tpu.core_type<tc>, window_params = [{transform_indices = @transform_0, window_bounds = array<i64: 1, 16, 64>}, {pipeline_mode = #tpu.pipeline_mode<synchronous>, transform_indices = @transform_1, window_bounds = array<i64: 36, 16>}, {pipeline_mode = #tpu.pipeline_mode<synchronous>, transform_indices = @transform_2, window_bounds = array<i64: 64, 136>}, {pipeline_mode = #tpu.pipeline_mode<synchronous>, transform_indices = @transform_3, window_bounds = array<i64: 3, 136, 272>}, {pipeline_mode = #tpu.pipeline_mode<synchronous>, transform_indices = @transform_4, window_bounds = array<i64: 1, 272>}, {pipeline_mode = #tpu.pipeline_mode<synchronous>, transform_indices = @transform_5, window_bounds = array<i64: 3, 272, 256>}, {pipeline_mode = #tpu.pipeline_mode<synchronous>, transform_indices = @transform_6, window_bounds = array<i64: 1, 256>}, {transform_indices = @transform_7, window_bounds = array<i64: 1, 32, 256>}]} {
    %c0 = arith.constant 0 : index
    %c0_0 = arith.constant 0 : index
    %0 = vector.load %arg2[%c0, %c0_0] : memref<36x16xf32, #tpu.memory_space<vmem>>, vector<36x16xf32>
    %c0_1 = arith.constant 0 : index
    %c0_2 = arith.constant 0 : index
    %c0_3 = arith.constant 0 : index
    %1 = vector.load %arg1[%c0_1, %c0_2, %c0_3] : memref<1x16x64xf32, #tpu.memory_space<vmem>>, vector<1x16x64xf32>
    %2 = vector.shape_cast %1 : vector<1x16x64xf32> to vector<16x64xf32>
    %cst = arith.constant dense<0.000000e+00> : vector<36x64xf32>
    %3 = tpu.matmul %0, %2, %cst {dimension_numbers = #tpu.dot_dimension_numbers<[1], [0], [0], [1], [0, 0, 1, 1], [], []>} : vector<36x16xf32>, vector<16x64xf32>, vector<36x64xf32> -> vector<36x64xf32>
    %c0_4 = arith.constant 0 : index
    %c0_5 = arith.constant 0 : index
    %4 = vector.load %arg3[%c0_4, %c0_5] : memref<64x136xf32, #tpu.memory_space<vmem>>, vector<64x136xf32>
    %cst_6 = arith.constant dense<0.000000e+00> : vector<36x136xf32>
    %5 = tpu.matmul %3, %4, %cst_6 {dimension_numbers = #tpu.dot_dimension_numbers<[1], [0], [0], [1], [0, 0, 1, 1], [], []>} : vector<36x64xf32>, vector<64x136xf32>, vector<36x136xf32> -> vector<36x136xf32>
    %cst_7 = arith.constant 0.000000e+00 : f32
    %6 = vector.broadcast %cst_7 : f32 to vector<34x272xf32>
    %7 = vector.extract_strided_slice %5 {offsets = [0, 0], sizes = [34, 136], strides = [1, 1]} : vector<36x136xf32> to vector<34x136xf32>
    %c0_8 = arith.constant 0 : index
    %c0_9 = arith.constant 0 : index
    %c0_10 = arith.constant 0 : index
    %8 = vector.load %arg4[%c0_8, %c0_9, %c0_10] : memref<3x136x272xf32, #tpu.memory_space<vmem>>, vector<1x136x272xf32>
    %9 = vector.shape_cast %8 : vector<1x136x272xf32> to vector<136x272xf32>
    %cst_11 = arith.constant dense<0.000000e+00> : vector<34x272xf32>
    %10 = tpu.matmul %7, %9, %cst_11 {dimension_numbers = #tpu.dot_dimension_numbers<[1], [0], [0], [1], [0, 0, 1, 1], [], []>} : vector<34x136xf32>, vector<136x272xf32>, vector<34x272xf32> -> vector<34x272xf32>
    %11 = arith.addf %6, %10 : vector<34x272xf32>
    %12 = vector.extract_strided_slice %5 {offsets = [1, 0], sizes = [34, 136], strides = [1, 1]} : vector<36x136xf32> to vector<34x136xf32>
    %c1 = arith.constant 1 : index
    %c0_12 = arith.constant 0 : index
    %c0_13 = arith.constant 0 : index
    %13 = vector.load %arg4[%c1, %c0_12, %c0_13] : memref<3x136x272xf32, #tpu.memory_space<vmem>>, vector<1x136x272xf32>
    %14 = vector.shape_cast %13 : vector<1x136x272xf32> to vector<136x272xf32>
    %cst_14 = arith.constant dense<0.000000e+00> : vector<34x272xf32>
    %15 = tpu.matmul %12, %14, %cst_14 {dimension_numbers = #tpu.dot_dimension_numbers<[1], [0], [0], [1], [0, 0, 1, 1], [], []>} : vector<34x136xf32>, vector<136x272xf32>, vector<34x272xf32> -> vector<34x272xf32>
    %16 = arith.addf %11, %15 : vector<34x272xf32>
    %17 = vector.extract_strided_slice %5 {offsets = [2, 0], sizes = [34, 136], strides = [1, 1]} : vector<36x136xf32> to vector<34x136xf32>
    %c2 = arith.constant 2 : index
    %c0_15 = arith.constant 0 : index
    %c0_16 = arith.constant 0 : index
    %18 = vector.load %arg4[%c2, %c0_15, %c0_16] : memref<3x136x272xf32, #tpu.memory_space<vmem>>, vector<1x136x272xf32>
    %19 = vector.shape_cast %18 : vector<1x136x272xf32> to vector<136x272xf32>
    %cst_17 = arith.constant dense<0.000000e+00> : vector<34x272xf32>
    %20 = tpu.matmul %17, %19, %cst_17 {dimension_numbers = #tpu.dot_dimension_numbers<[1], [0], [0], [1], [0, 0, 1, 1], [], []>} : vector<34x136xf32>, vector<136x272xf32>, vector<34x272xf32> -> vector<34x272xf32>
    %21 = arith.addf %16, %20 : vector<34x272xf32>
    %22 = tpu.iota {dimensions = array<i32: 0>} : vector<34x272xi32>
    %c1_i32 = arith.constant 1 : i32
    %23 = vector.broadcast %c1_i32 : i32 to vector<34x272xi32>
    %24 = arith.cmpi sge, %22, %23 : vector<34x272xi32>
    %c32_i32 = arith.constant 32 : i32
    %25 = vector.broadcast %c32_i32 : i32 to vector<34x272xi32>
    %26 = arith.cmpi sle, %22, %25 : vector<34x272xi32>
    %27 = arith.andi %24, %26 : vector<34x272xi1>
    %c0_18 = arith.constant 0 : index
    %c0_19 = arith.constant 0 : index
    %28 = vector.load %arg5[%c0_18, %c0_19] : memref<1x272xf32, #tpu.memory_space<vmem>>, vector<1x272xf32>
    %29 = vector.broadcast %28 : vector<1x272xf32> to vector<34x272xf32>
    %30 = arith.addf %21, %29 : vector<34x272xf32>
    %cst_20 = arith.constant 0.000000e+00 : f32
    %31 = vector.broadcast %cst_20 : f32 to vector<34x272xf32>
    %32 = arith.maximumf %30, %31 : vector<34x272xf32>
    %cst_21 = arith.constant 0.000000e+00 : f32
    %33 = vector.broadcast %cst_21 : f32 to vector<34x272xf32>
    %34 = arith.select %27, %32, %33 : vector<34x272xi1>, vector<34x272xf32>
    %cst_22 = arith.constant 0.000000e+00 : f32
    %35 = vector.broadcast %cst_22 : f32 to vector<32x256xf32>
    %36 = vector.extract_strided_slice %34 {offsets = [0, 0], sizes = [32, 272], strides = [1, 1]} : vector<34x272xf32> to vector<32x272xf32>
    %c0_23 = arith.constant 0 : index
    %c0_24 = arith.constant 0 : index
    %c0_25 = arith.constant 0 : index
    %37 = vector.load %arg6[%c0_23, %c0_24, %c0_25] : memref<3x272x256xf32, #tpu.memory_space<vmem>>, vector<1x272x256xf32>
    %38 = vector.shape_cast %37 : vector<1x272x256xf32> to vector<272x256xf32>
    %cst_26 = arith.constant dense<0.000000e+00> : vector<32x256xf32>
    %39 = tpu.matmul %36, %38, %cst_26 {dimension_numbers = #tpu.dot_dimension_numbers<[1], [0], [0], [1], [0, 0, 1, 1], [], []>} : vector<32x272xf32>, vector<272x256xf32>, vector<32x256xf32> -> vector<32x256xf32>
    %40 = arith.addf %35, %39 : vector<32x256xf32>
    %41 = vector.extract_strided_slice %34 {offsets = [1, 0], sizes = [32, 272], strides = [1, 1]} : vector<34x272xf32> to vector<32x272xf32>
    %c1_27 = arith.constant 1 : index
    %c0_28 = arith.constant 0 : index
    %c0_29 = arith.constant 0 : index
    %42 = vector.load %arg6[%c1_27, %c0_28, %c0_29] : memref<3x272x256xf32, #tpu.memory_space<vmem>>, vector<1x272x256xf32>
    %43 = vector.shape_cast %42 : vector<1x272x256xf32> to vector<272x256xf32>
    %cst_30 = arith.constant dense<0.000000e+00> : vector<32x256xf32>
    %44 = tpu.matmul %41, %43, %cst_30 {dimension_numbers = #tpu.dot_dimension_numbers<[1], [0], [0], [1], [0, 0, 1, 1], [], []>} : vector<32x272xf32>, vector<272x256xf32>, vector<32x256xf32> -> vector<32x256xf32>
    %45 = arith.addf %40, %44 : vector<32x256xf32>
    %46 = vector.extract_strided_slice %34 {offsets = [2, 0], sizes = [32, 272], strides = [1, 1]} : vector<34x272xf32> to vector<32x272xf32>
    %c2_31 = arith.constant 2 : index
    %c0_32 = arith.constant 0 : index
    %c0_33 = arith.constant 0 : index
    %47 = vector.load %arg6[%c2_31, %c0_32, %c0_33] : memref<3x272x256xf32, #tpu.memory_space<vmem>>, vector<1x272x256xf32>
    %48 = vector.shape_cast %47 : vector<1x272x256xf32> to vector<272x256xf32>
    %cst_34 = arith.constant dense<0.000000e+00> : vector<32x256xf32>
    %49 = tpu.matmul %46, %48, %cst_34 {dimension_numbers = #tpu.dot_dimension_numbers<[1], [0], [0], [1], [0, 0, 1, 1], [], []>} : vector<32x272xf32>, vector<272x256xf32>, vector<32x256xf32> -> vector<32x256xf32>
    %50 = arith.addf %45, %49 : vector<32x256xf32>
    %c0_35 = arith.constant 0 : index
    %c0_36 = arith.constant 0 : index
    %51 = vector.load %arg7[%c0_35, %c0_36] : memref<1x256xf32, #tpu.memory_space<vmem>>, vector<1x256xf32>
    %52 = vector.broadcast %51 : vector<1x256xf32> to vector<32x256xf32>
    %53 = arith.addf %50, %52 : vector<32x256xf32>
    %cst_37 = arith.constant 0.000000e+00 : f32
    %54 = vector.broadcast %cst_37 : f32 to vector<32x256xf32>
    %55 = arith.maximumf %53, %54 : vector<32x256xf32>
    %c0_38 = arith.constant 0 : index
    %c0_39 = arith.constant 0 : index
    %c0_40 = arith.constant 0 : index
    %56 = vector.load %arg8[%c0_38, %c0_39, %c0_40] : memref<1x32x256xf32, #tpu.memory_space<vmem>>, vector<1x32x256xf32>
    %57 = vector.shape_cast %56 : vector<1x32x256xf32> to vector<32x256xf32>
    %58 = vector.shape_cast %55 : vector<32x256xf32> to vector<1x32x256xf32>
    tpu.vector_store %arg8[%c0_38, %c0_39, %c0_40], %58 {strides = array<i32>} : memref<1x32x256xf32, #tpu.memory_space<vmem>>, vector<1x32x256xf32>,
    return
  }
  func.func @transform_0(%arg0: i32) -> (i32, i32, i32) {
    %c0_i32 = arith.constant 0 : i32
    %c0_i32_0 = arith.constant 0 : i32
    %c0_i32_1 = arith.constant 0 : i32
    return %arg0, %c0_i32, %c0_i32_0 : i32, i32, i32
  }
  func.func @transform_1(%arg0: i32) -> (i32, i32) {
    %c0_i32 = arith.constant 0 : i32
    %c0_i32_0 = arith.constant 0 : i32
    %c0_i32_1 = arith.constant 0 : i32
    return %c0_i32, %c0_i32_0 : i32, i32
  }
  func.func @transform_2(%arg0: i32) -> (i32, i32) {
    %c0_i32 = arith.constant 0 : i32
    %c0_i32_0 = arith.constant 0 : i32
    %c0_i32_1 = arith.constant 0 : i32
    return %c0_i32, %c0_i32_0 : i32, i32
  }
  func.func @transform_3(%arg0: i32) -> (i32, i32, i32) {
    %c0_i32 = arith.constant 0 : i32
    %c0_i32_0 = arith.constant 0 : i32
    %c0_i32_1 = arith.constant 0 : i32
    %c0_i32_2 = arith.constant 0 : i32
    return %c0_i32, %c0_i32_0, %c0_i32_1 : i32, i32, i32
  }
  func.func @transform_4(%arg0: i32) -> (i32, i32) {
    %c0_i32 = arith.constant 0 : i32
    %c0_i32_0 = arith.constant 0 : i32
    %c0_i32_1 = arith.constant 0 : i32
    return %c0_i32, %c0_i32_0 : i32, i32
  }
  func.func @transform_5(%arg0: i32) -> (i32, i32, i32) {
    %c0_i32 = arith.constant 0 : i32
    %c0_i32_0 = arith.constant 0 : i32
    %c0_i32_1 = arith.constant 0 : i32
    %c0_i32_2 = arith.constant 0 : i32
    return %c0_i32, %c0_i32_0, %c0_i32_1 : i32, i32, i32
  }
  func.func @transform_6(%arg0: i32) -> (i32, i32) {
    %c0_i32 = arith.constant 0 : i32
    %c0_i32_0 = arith.constant 0 : i32
    %c0_i32_1 = arith.constant 0 : i32
    return %c0_i32, %c0_i32_0 : i32, i32
  }
  func.func @transform_7(%arg0: i32) -> (i32, i32, i32) {
    %c0_i32 = arith.constant 0 : i32
    %c0_i32_0 = arith.constant 0 : i32
    %c0_i32_1 = arith.constant 0 : i32
    return %arg0, %c0_i32, %c0_i32_0 : i32, i32, i32
  }
}

</mosaic_0001>

<bundles_post_ra>
// kernel: tile.10
= control target key start
LH: loop header
LB: loop body
LE: loop exit
PB: predicated region body
PF: predicated region fallthrough
CT: control target
= control target key end

     0   :  { %s40_s0 = inlined_call_operand.vmem [shape: f32[8], index: 0, kind: input, shape index: {}]   ;;  %s41_s1 = inlined_call_operand.vmem [shape: f32[32,8], index: 1, kind: output, shape index: {}]  }
   0x1   :  { %v4_v0 = vld [vmem:[%s40_s0] ss:$0 sm:$0xff] }
   0x2   :  { %5 = vst [vmem:[%s41_s1] sm:$0xff] %v4_v0  ;;  %12 = vst [vmem:[%s41_s1 + $0x8] sm:$0xff] %v4_v0 }
   0x3   :  { %13 = vst [vmem:[%s41_s1 + $0x10] sm:$0xff] %v4_v0  ;;  %14 = vst [vmem:[%s41_s1 + $0x18] sm:$0xff] %v4_v0 }

// kernel: tile.11
= control target key start
LH: loop header
LB: loop body
LE: loop exit
PB: predicated region body
PF: predicated region fallthrough
CT: control target
= control target key end

     0   :  { %s7_s6 = smov 3  ;;  %s21_s9 = smov 3  ;;  %vm4_vm0 = vcmask 64512   ;;  %vm11_vm1 = vcmask 1048512   ;;  %vm18_vm2 = vcmask 982912   ;;  %vm25_vm3 = vcmask 917312   ;;  %s225_s0 = inlined_call_operand.vmem [shape: f32[32,8], index: 0, kind: input, shape index: {}]   ;;  %s226_s1 = inlined_call_operand.vmem [shape: f32[256], index: 1, kind: output, shape index: {}]  }
   0x1   :  { %v119_v0 = vld [vmem:[%s225_s0 + $0xf] ss:$16 sm:%s7_s6]   ;;  %s149_s10 = smov 120   ;;  %v121_v1 = vld [vmem:[%s225_s0 + $0xd] ss:$16 sm:%s21_s9]   ;;  %s14_s13 = smov 3 }
   0x2   :  { %9 = vrot.lane.b32.xlu0 %v119_v0, %s149_s10  ;;  %s150_s14 = smov 104   ;;  %v120_v2 = vld [vmem:[%s225_s0 + $0xe] ss:$16 sm:%s14_s13]   ;;  %s28_s17 = smov 3  ;;  %vm32_vm4 = vcmask 851712   ;;  %vm39_vm5 = vcmask 786112  }
   0x3   :  { %23 = vrot.lane.b32.xlu1 %v121_v1, %s150_s14  ;;  %v122_v3 = vld [vmem:[%s225_s0 + $0xc] ss:$16 sm:%s28_s17]   ;;  %s35_s20 = smov 3  ;;  %s42_s21 = smov 3  ;;  %vm46_vm6 = vcmask 720512   ;;  %vm53_vm7 = vcmask 654912  }
   0x4   :  { %s151_s22 = smov 112   ;;  %s152_s23 = smov 96   ;;  %v123_v4 = vld [vmem:[%s225_s0 + $0xb] ss:$16 sm:%s35_s20]   ;;  %v124_v5 = vld [vmem:[%s225_s0 + $0xa] ss:$16 sm:%s42_s21]  }
   0x5   :  { %s49_s28 = smov 3  ;;  %s56_s29 = smov 3  ;;  %vm60_vm8 = vcmask 589312   ;;  %vm67_vm9 = vcmask 523712   ;;  %vm74_vm10 = vcmask 458112   ;;  %vm81_vm11 = vcmask 392512  }
   0x6   :  { %16 = vrot.lane.b32.xlu0 %v120_v2, %s151_s22  ;;  %s153_s30 = smov 88   ;;  %s154_s2 = smov 80   ;;  %v125_v6 = vld [vmem:[%s225_s0 + $0x9] ss:$16 sm:%s49_s28]   ;;  %vm88_vm12 = vcmask 326912   ;;  %vm95_vm13 = vcmask 261312  }
   0x7   :  { %30 = vrot.lane.b32.xlu1 %v122_v3, %s152_s23  ;;  %v126_v7 = vld [vmem:[%s225_s0 + $0x8] ss:$16 sm:%s56_s29]   ;;  %s63_s7 = smov 3  ;;  %s70_s8 = smov 3  ;;  %vm102_vm14 = vcmask 195712   ;;  %vm109_vm15 = vcmask 130112  }
   0x8   :  { %s155_s9 = smov 72   ;;  %s156_s10 = smov 64   ;;  %v127_v8 = vld [vmem:[%s225_s0 + $0x7] ss:$16 sm:%s63_s7]   ;;  %v128_v9 = vld [vmem:[%s225_s0 + $0x6] ss:$16 sm:%s70_s8]  }
   0x9   :  { %s2_s13 = smov 3  ;;  %s77_s16 = smov 3 }
   0xa   :  { %37 = vrot.lane.b32.xlu0 %v123_v4, %s153_s30  ;;  %v3_v10 = vld [vmem:[%s225_s0] ss:$16 sm:%s2_s13]   ;;  %s84_s19 = smov 3  ;;  %s157_s20 = smov 56  }
   0xb   :  { %44 = vrot.lane.b32.xlu1 %v124_v5, %s154_s2  ;;  %5 = vst.msk [vmem:[#allocation0] sm:$0x3] %vm4_vm0, %v3_v10   ;;  %s158_s21 = smov 48   ;;  %v129_v11 = vld [vmem:[%s225_s0 + $0x5] ss:$16 sm:%s77_s16]   ;;  %s91_s26 = smov 3 }
   0xc   :  { %v130_v12 = vld [vmem:[%s225_s0 + $0x4] ss:$16 sm:%s84_s19]   ;;  %s98_s27 = smov 3  ;;  %s159_s28 = smov 40   ;;  %v131_v13 = vld [vmem:[%s225_s0 + $0x3] ss:$16 sm:%s91_s26]  }
   0xd   :  { %s160_s29 = smov 32   ;;  %v132_v14 = vld [vmem:[%s225_s0 + $0x2] ss:$16 sm:%s98_s27]   ;;  %s105_s5 = smov 3 }
   0xe   :  { %51 = vrot.lane.b32.xlu0 %v125_v6, %s155_s9  ;;  %s161_s6 = smov 24   ;;  %s162_s7 = smov 16   ;;  %v133_v15 = vld [vmem:[%s225_s0 + $0x1] ss:$16 sm:%s105_s5]  }
   0xf   :  { %58 = vrot.lane.b32.xlu1 %v126_v7, %s156_s10  ;;  %s163_s0 = smov 8  }
  0x12   :  { %65 = vrot.lane.b32.xlu0 %v127_v8, %s157_s20 }
  0x13   :  { %72 = vrot.lane.b32.xlu1 %v128_v9, %s158_s21 }
  0x16   :  { %79 = vrot.lane.b32.xlu0 %v129_v11, %s159_s28 }
  0x17   :  { %86 = vrot.lane.b32.xlu1 %v130_v12, %s160_s29 }
  0x1a   :  { %93 = vrot.lane.b32.xlu0 %v131_v13, %s161_s6 }
  0x1b   :  { %100 = vrot.lane.b32.xlu1 %v132_v14, %s162_s7 }
  0x1e   :  { %107 = vrot.lane.b32.xlu0 %v133_v15, %s163_s0 }
  0x74   :  { %v10_v16 = vpop.permute.xlu0 %9  }
  0x75   :  { %12 = vst.msk [vmem:[#allocation0] sm:$0x3] %vm11_vm1, %v10_v16   ;;  %v24_v17 = vpop.permute.xlu1 %23  }
  0x78   :  { %v17_v18 = vpop.permute.xlu0 %16  }
  0x79   :  { %19 = vst.msk [vmem:[#allocation0] sm:$0x3] %vm18_vm2, %v17_v18   ;;  %v31_v19 = vpop.permute.xlu1 %30  }
  0x7a   :  { %26 = vst.msk [vmem:[#allocation0] sm:$0x3] %vm25_vm3, %v24_v17  }
  0x7b   :  { %33 = vst.msk [vmem:[#allocation0] sm:$0x3] %vm32_vm4, %v31_v19  }
  0x7c   :  { %v38_v20 = vpop.permute.xlu0 %37  }
  0x7d   :  { %40 = vst.msk [vmem:[#allocation0] sm:$0x3] %vm39_vm5, %v38_v20   ;;  %v45_v21 = vpop.permute.xlu1 %44  }
  0x7e   :  { %47 = vst.msk [vmem:[#allocation0] sm:$0x3] %vm46_vm6, %v45_v21  }
  0x80   :  { %v52_v22 = vpop.permute.xlu0 %51  }
  0x81   :  { %54 = vst.msk [vmem:[#allocation0] sm:$0x3] %vm53_vm7, %v52_v22   ;;  %v59_v23 = vpop.permute.xlu1 %58  }
  0x82   :  { %61 = vst.msk [vmem:[#allocation0] sm:$0x3] %vm60_vm8, %v59_v23  }
  0x84   :  { %v66_v24 = vpop.permute.xlu0 %65  }
  0x85   :  { %68 = vst.msk [vmem:[#allocation0] sm:$0x3] %vm67_vm9, %v66_v24   ;;  %v73_v25 = vpop.permute.xlu1 %72  }
  0x86   :  { %75 = vst.msk [vmem:[#allocation0] sm:$0x3] %vm74_vm10, %v73_v25  }
  0x88   :  { %v80_v26 = vpop.permute.xlu0 %79  }
  0x89   :  { %82 = vst.msk [vmem:[#allocation0] sm:$0x3] %vm81_vm11, %v80_v26   ;;  %v87_v27 = vpop.permute.xlu1 %86  }
  0x8a   :  { %89 = vst.msk [vmem:[#allocation0] sm:$0x3] %vm88_vm12, %v87_v27  }
  0x8c   :  { %v94_v28 = vpop.permute.xlu0 %93  }
  0x8d   :  { %96 = vst.msk [vmem:[#allocation0] sm:$0x3] %vm95_vm13, %v94_v28   ;;  %v101_v29 = vpop.permute.xlu1 %100  }
  0x8e   :  { %103 = vst.msk [vmem:[#allocation0] sm:$0x3] %vm102_vm14, %v101_v29  }
  0x90   :  { %v108_v30 = vpop.permute.xlu0 %107  }
  0x91   :  { %110 = vst.msk [vmem:[#allocation0] sm:$0x3] %vm109_vm15, %v108_v30  }
  0x98   :  { %v115_v31 = vld [vmem:[#allocation0] sm:$0x3] }
  0x99   :  { %118 = vst [vmem:[%s226_s1] sm:$0x3] %v115_v31 }

// kernel: tile.15
= control target key start
LH: loop header
LB: loop body
LE: loop exit
PB: predicated region body
PF: predicated region fallthrough
CT: control target
= control target key end

     0   :  { %s7_s6 = smov 3  ;;  %s21_s9 = smov 3  ;;  %vm4_vm0 = vcmask 64512   ;;  %vm11_vm1 = vcmask 1048512   ;;  %vm18_vm2 = vcmask 982912   ;;  %vm25_vm3 = vcmask 917312   ;;  %s235_s0 = inlined_call_operand.vmem [shape: f32[32,8], index: 0, kind: input, shape index: {}]   ;;  %s236_s1 = inlined_call_operand.vmem [shape: f32[1,256], index: 1, kind: output, shape index: {}]  }
   0x1   :  { %v125_v0 = vld [vmem:[%s235_s0 + $0xf] ss:$16 sm:%s7_s6]   ;;  %s156_s10 = smov 120   ;;  %v127_v1 = vld [vmem:[%s235_s0 + $0xd] ss:$16 sm:%s21_s9]   ;;  %s14_s13 = smov 3 }
   0x2   :  { %9 = vrot.lane.b32.xlu0 %v125_v0, %s156_s10  ;;  %s157_s14 = smov 104   ;;  %v126_v2 = vld [vmem:[%s235_s0 + $0xe] ss:$16 sm:%s14_s13]   ;;  %s28_s17 = smov 3  ;;  %vm32_vm4 = vcmask 851712   ;;  %vm39_vm5 = vcmask 786112  }
   0x3   :  { %23 = vrot.lane.b32.xlu1 %v127_v1, %s157_s14  ;;  %v128_v3 = vld [vmem:[%s235_s0 + $0xc] ss:$16 sm:%s28_s17]   ;;  %s35_s20 = smov 3  ;;  %s42_s21 = smov 3  ;;  %vm46_vm6 = vcmask 720512   ;;  %vm53_vm7 = vcmask 654912  }
   0x4   :  { %s158_s22 = smov 112   ;;  %s159_s23 = smov 96   ;;  %v129_v4 = vld [vmem:[%s235_s0 + $0xb] ss:$16 sm:%s35_s20]   ;;  %v130_v5 = vld [vmem:[%s235_s0 + $0xa] ss:$16 sm:%s42_s21]  }
   0x5   :  { %s49_s28 = smov 3  ;;  %s56_s29 = smov 3  ;;  %vm60_vm8 = vcmask 589312   ;;  %vm67_vm9 = vcmask 523712   ;;  %vm74_vm10 = vcmask 458112   ;;  %vm81_vm11 = vcmask 392512  }
   0x6   :  { %16 = vrot.lane.b32.xlu0 %v126_v2, %s158_s22  ;;  %s160_s30 = smov 88   ;;  %s161_s2 = smov 80   ;;  %v131_v6 = vld [vmem:[%s235_s0 + $0x9] ss:$16 sm:%s49_s28]   ;;  %vm88_vm12 = vcmask 326912   ;;  %vm95_vm13 = vcmask 261312  }
   0x7   :  { %30 = vrot.lane.b32.xlu1 %v128_v3, %s159_s23  ;;  %v132_v7 = vld [vmem:[%s235_s0 + $0x8] ss:$16 sm:%s56_s29]   ;;  %s63_s7 = smov 3  ;;  %s70_s8 = smov 3  ;;  %vm102_vm14 = vcmask 195712   ;;  %vm109_vm15 = vcmask 130112  }
   0x8   :  { %s162_s9 = smov 72   ;;  %s163_s10 = smov 64   ;;  %v133_v8 = vld [vmem:[%s235_s0 + $0x7] ss:$16 sm:%s63_s7]   ;;  %v134_v9 = vld [vmem:[%s235_s0 + $0x6] ss:$16 sm:%s70_s8]  }
   0x9   :  { %s2_s13 = smov 3  ;;  %s77_s16 = smov 3 }
   0xa   :  { %37 = vrot.lane.b32.xlu0 %v129_v4, %s160_s30  ;;  %v3_v10 = vld [vmem:[%s235_s0] ss:$16 sm:%s2_s13]   ;;  %s84_s19 = smov 3  ;;  %s164_s20 = smov 56  }
   0xb   :  { %44 = vrot.lane.b32.xlu1 %v130_v5, %s161_s2  ;;  %5 = vst.msk [vmem:[#allocation0] ss:$8 sm:$0x3] %vm4_vm0, %v3_v10   ;;  %s165_s21 = smov 48   ;;  %v135_v11 = vld [vmem:[%s235_s0 + $0x5] ss:$16 sm:%s77_s16]  }
   0xc   :  { %v136_v12 = vld [vmem:[%s235_s0 + $0x4] ss:$16 sm:%s84_s19]   ;;  %s91_s26 = smov 3  ;;  %s98_s27 = smov 3 }
   0xd   :  { %s166_s28 = smov 40   ;;  %s167_s29 = smov 32   ;;  %v137_v13 = vld [vmem:[%s235_s0 + $0x3] ss:$16 sm:%s91_s26]   ;;  %v138_v14 = vld [vmem:[%s235_s0 + $0x2] ss:$16 sm:%s98_s27]  }
   0xe   :  { %51 = vrot.lane.b32.xlu0 %v131_v6, %s162_s9  ;;  %s105_s5 = smov 3  ;;  %s168_s6 = smov 24  }
   0xf   :  { %58 = vrot.lane.b32.xlu1 %v132_v7, %s163_s10  ;;  %s169_s7 = smov 16   ;;  %v139_v15 = vld [vmem:[%s235_s0 + $0x1] ss:$16 sm:%s105_s5]   ;;  %s170_s0 = smov 8  }
  0x12   :  { %65 = vrot.lane.b32.xlu0 %v133_v8, %s164_s20 }
  0x13   :  { %72 = vrot.lane.b32.xlu1 %v134_v9, %s165_s21 }
  0x16   :  { %79 = vrot.lane.b32.xlu0 %v135_v11, %s166_s28 }
  0x17   :  { %86 = vrot.lane.b32.xlu1 %v136_v12, %s167_s29 }
  0x1a   :  { %93 = vrot.lane.b32.xlu0 %v137_v13, %s168_s6 }
  0x1b   :  { %100 = vrot.lane.b32.xlu1 %v138_v14, %s169_s7 }
  0x1e   :  { %107 = vrot.lane.b32.xlu0 %v139_v15, %s170_s0 }
  0x74   :  { %v10_v16 = vpop.permute.xlu0 %9  }
  0x75   :  { %12 = vst.msk [vmem:[#allocation0] ss:$8 sm:$0x3] %vm11_vm1, %v10_v16   ;;  %v24_v17 = vpop.permute.xlu1 %23  }
  0x78   :  { %v17_v18 = vpop.permute.xlu0 %16  }
  0x79   :  { %19 = vst.msk [vmem:[#allocation0] ss:$8 sm:$0x3] %vm18_vm2, %v17_v18   ;;  %v31_v19 = vpop.permute.xlu1 %30  }
  0x7a   :  { %26 = vst.msk [vmem:[#allocation0] ss:$8 sm:$0x3] %vm25_vm3, %v24_v17  }
  0x7b   :  { %33 = vst.msk [vmem:[#allocation0] ss:$8 sm:$0x3] %vm32_vm4, %v31_v19  }
  0x7c   :  { %v38_v20 = vpop.permute.xlu0 %37  }
  0x7d   :  { %40 = vst.msk [vmem:[#allocation0] ss:$8 sm:$0x3] %vm39_vm5, %v38_v20   ;;  %v45_v21 = vpop.permute.xlu1 %44  }
  0x7e   :  { %47 = vst.msk [vmem:[#allocation0] ss:$8 sm:$0x3] %vm46_vm6, %v45_v21  }
  0x80   :  { %v52_v22 = vpop.permute.xlu0 %51  }
  0x81   :  { %54 = vst.msk [vmem:[#allocation0] ss:$8 sm:$0x3] %vm53_vm7, %v52_v22   ;;  %v59_v23 = vpop.permute.xlu1 %58  }
  0x82   :  { %61 = vst.msk [vmem:[#allocation0] ss:$8 sm:$0x3] %vm60_vm8, %v59_v23  }
  0x84   :  { %v66_v24 = vpop.permute.xlu0 %65  }
  0x85   :  { %68 = vst.msk [vmem:[#allocation0] ss:$8 sm:$0x3] %vm67_vm9, %v66_v24   ;;  %v73_v25 = vpop.permute.xlu1 %72  }
  0x86   :  { %75 = vst.msk [vmem:[#allocation0] ss:$8 sm:$0x3] %vm74_vm10, %v73_v25  }
  0x88   :  { %v80_v26 = vpop.permute.xlu0 %79  }
  0x89   :  { %82 = vst.msk [vmem:[#allocation0] ss:$8 sm:$0x3] %vm81_vm11, %v80_v26   ;;  %v87_v27 = vpop.permute.xlu1 %86  }
  0x8a   :  { %89 = vst.msk [vmem:[#allocation0] ss:$8 sm:$0x3] %vm88_vm12, %v87_v27  }
  0x8c   :  { %v94_v28 = vpop.permute.xlu0 %93  }
  0x8d   :  { %96 = vst.msk [vmem:[#allocation0] ss:$8 sm:$0x3] %vm95_vm13, %v94_v28   ;;  %v101_v29 = vpop.permute.xlu1 %100  }
  0x8e   :  { %103 = vst.msk [vmem:[#allocation0] ss:$8 sm:$0x3] %vm102_vm14, %v101_v29  }
  0x90   :  { %v108_v30 = vpop.permute.xlu0 %107  }
  0x91   :  { %110 = vst.msk [vmem:[#allocation0] ss:$8 sm:$0x3] %vm109_vm15, %v108_v30  }
  0x98   :  { %v115_v31 = vld [vmem:[#allocation0] sm:$0x1]  ;;  %v120_v32 = vld [vmem:[#allocation0 + $0x8] sm:$0x1] }
  0x99   :  { %118 = vst [vmem:[%s236_s1] sm:$0x1] %v115_v31  ;;  %140 = vst [vmem:[%s236_s1 + $0x1] sm:$0x1] %v120_v32 }

// kernel: conv_up_forward.1
= control target key start
LH: loop header
LB: loop body
LE: loop exit
PB: predicated region body
PF: predicated region fallthrough
CT: control target
= control target key end

     0   :  { %s2755_s24 = smov 0   ;;  %s4391_s0 = inlined_call_operand.vmem [shape: f32[2,16,64], index: 0, kind: input, shape index: {}]   ;;  %s4392_s1 = inlined_call_operand.vmem [shape: f32[36,16], index: 1, kind: input, shape index: {}]   ;;  %s4393_s2 = inlined_call_operand.vmem [shape: f32[64,136], index: 2, kind: input, shape index: {}]   ;;  %s4394_s3 = inlined_call_operand.vmem [shape: f32[3,136,272], index: 3, kind: input, shape index: {}]   ;;  %s4395_s4 = inlined_call_operand.vmem [shape: f32[1,272], index: 4, kind: input, shape index: {}]   ;;  %s4396_s5 = inlined_call_operand.vmem [shape: f32[3,272,256], index: 5, kind: input, shape index: {}]   ;;  %s4397_s6 = inlined_call_operand.vmem [shape: f32[1,256], index: 6, kind: input, shape index: {}]   ;;  %s4398_s7 = inlined_call_operand.vmem [shape: f32[2,32,256], index: 7, kind: output, shape index: {}]  }
   0x1 LB: > { %s2364_s25 = sadd.s32 4294967295, %s2711_s24   ;;  %p2368_p0 = scmp.ge.s32.totalorder %s2711_s24, 1  ;;  %s2711_s24 = sphi %s2755_s24, %s17_s24  }
   0x2   : > { %p237_p1 = scmp.lt.s32.totalorder %s2711_s24, 3 }
   0x4   : > { %p238_p2 = pnand %p2368_p0, %p237_p1 }
   0x5   : > { %p269_p3 = scmp.lt.s32.totalorder (!%p238_p2), %s2364_s25, 1 }
   0x6   : > { %241 = sbr.rel (%p238_p2) target bundleno = 1027 (0x403), region = 48 }
   0xb   : > { %v2713_v0 = vmov 0.0   ;;  %vm2714_vm0 = vmmov 0   ;;  %s4400_s25 = smov (!%p269_p3, %s2364_s25), 1  ;;  %v407_v1 = vld [vmem:[%s4393_s2 + $0x78] sm:$0xff]  ;;  %v406_v2 = vld [vmem:[%s4393_s2 + $0x70] sm:$0xff]  ;;  %v405_v3 = vld [vmem:[%s4393_s2 + $0x68] sm:$0xff] }
   0xc   : > { %2676 = vmatprep.subr.mxu0 %v2713_v0  ;;  %2680 = vmatprep.mubr.msk.f32.mxu0 %vm2714_vm0, %v2713_v0  ;;  %v404_v4 = vld [vmem:[%s4393_s2 + $0x60] sm:$0xff]  ;;  %s2667_s11 = sshll.u32 %s4400_s25, 4  ;;  %v403_v5 = vld [vmem:[%s4393_s2 + $0x58] sm:$0xff]  ;;  %v402_v6 = vld [vmem:[%s4393_s2 + $0x50] sm:$0xff]  ;;  %vm286_vm1 = vcmask 130048   ;;  %vm408_vm2 = vcmask 523264  }
   0xd   : > { %488 = vmatprep.mubr.f32.mxu1 %v2713_v0  ;;  %440 = vmatprep.subr.mxu1 %v407_v1  ;;  %s273_s16 = scalar_lea.vmem %s4391_s0, %s2667_s11  ;;  %v401_v9 = vld [vmem:[%s4393_s2 + $0x48] sm:$0xff]  ;;  %v279_v10 = vld [vmem:[%s4392_s1] sm:$0xff]  ;;  %v399_v12 = vld [vmem:[%s4393_s2 + $0x38] sm:$0xff]  ;;  %vm1099_vm3 = vcmask 1045504   ;;  %vm632_vm4 = vcmask 1046528   ;;  %vm656_vm5 = vcmask 64512  }
   0xe   : > { %441 = vmatpush1.msra.mxu1 %v406_v2  ;;  %v285_v7 = vld [vmem:[%s273_s16 + $0x8] sm:$0xff]  ;;  %v284_v8 = vld [vmem:[%s273_s16] sm:$0xff]  ;;  %v398_v13 = vld [vmem:[%s4393_s2 + $0x30] sm:$0xff]  ;;  %s2668_s11 = sshll.u32 %s4400_s25, 6 }
   0xf   : > { %442 = vmatprep.subr.mxu1 %v405_v3  ;;  %2677 = vmatpush3.msra.mxu0 %v285_v7  ;;  %v400_v11 = vld [vmem:[%s4393_s2 + $0x40] sm:$0xff]  ;;  %v397_v14 = vld [vmem:[%s4393_s2 + $0x28] sm:$0xff]  ;;  %v395_v17 = vld [vmem:[%s4393_s2 + $0x18] sm:$0xff]  ;;  %s4367_s14 = scalar_lea.vmem %s4398_s7, %s2668_s11 }
  0x10   : > { %443 = vmatpush1.msra.mxu1 %v404_v4  ;;  %2678 = vmatprep.subr.mxu0 %v2713_v0  ;;  %v280_v15 = vld [vmem:[%s4392_s1 + $0x8] sm:$0xff]  ;;  %v396_v16 = vld [vmem:[%s4393_s2 + $0x20] sm:$0xff]  ;;  %v394_v18 = vld [vmem:[%s4393_s2 + $0x10] sm:$0xff] }
  0x11   : > { %444 = vmatprep.subr.mxu1 %v403_v5  ;;  %2679 = vmatpush3.msra.mxu0 %v284_v8  ;;  %v393_v19 = vld [vmem:[%s4393_s2 + $0x8] sm:$0xff]  ;;  %v281_v20 = vld [vmem:[%s4392_s1 + $0x10] sm:$0xff]  ;;  %v282_v21 = vld [vmem:[%s4392_s1 + $0x18] sm:$0xff] }
  0x12   : > { %445 = vmatpush1.msra.mxu1 %v402_v6  ;;  %2681 = vmatmul.mubr.msk.f32.vlgmr.msra.gmra.mxu0 %vm286_vm1, %v279_v10  ;;  %v283_v22 = vld [vmem:[%s4392_s1 + $0x20] sm:$0xf]  ;;  %v2429_v24 = vld [vmem:[%s4394_s3 + $0x308] sm:$0xff]  ;;  %v2426_v26 = vld [vmem:[%s4394_s3 + $0x2f0] sm:$0xff] }
  0x13   : > { %446 = vmatprep.subr.mxu1 %v401_v9  ;;  %2683 = vmatprep.mubr.msk.f32.mxu0 %vm2714_vm0, %v2713_v0  ;;  %v392_v23 = vld [vmem:[%s4393_s2] sm:$0xff]  ;;  %v2425_v27 = vld [vmem:[%s4394_s3 + $0x2e8] sm:$0xff]  ;;  %v2423_v28 = vld [vmem:[%s4394_s3 + $0x2d8] sm:$0xff] }
  0x14   : > { %447 = vmatpush1.msra.mxu1 %v400_v11  ;;  %v2428_v25 = vld [vmem:[%s4394_s3 + $0x300] sm:$0xff]  ;;  %667 = vmatprep.subr.mxu0 %v2429_v24  ;;  %v2422_v29 = vld [vmem:[%s4394_s3 + $0x2d0] sm:$0xff]  ;;  %v2419_v31 = vld [vmem:[%s4394_s3 + $0x2b8] sm:$0xff] }
  0x15   : > { %448 = vmatprep.subr.mxu1 %v399_v12  ;;  %668 = vmatpush1.msra.mxu0 %v2428_v25  ;;  %v2420_v30 = vld [vmem:[%s4394_s3 + $0x2c0] sm:$0xff]  ;;  %v2417_v32 = vld [vmem:[%s4394_s3 + $0x2a8] sm:$0xff]  ;;  %v2414_v34 = vld [vmem:[%s4394_s3 + $0x290] sm:$0xff] }
  0x16   : > { %449 = vmatpush1.msra.mxu1 %v398_v13  ;;  %2684 = vmatmul.mubr.msk.f32.gmra.mxu0 %vm286_vm1, %v280_v15  ;;  %v2416_v33 = vld [vmem:[%s4394_s3 + $0x2a0] sm:$0xff]  ;;  %v2413_v35 = vld [vmem:[%s4394_s3 + $0x288] sm:$0xff]  ;;  %v2411_v36 = vld [vmem:[%s4394_s3 + $0x278] sm:$0xff] }
  0x17   : > { %450 = vmatprep.subr.mxu1 %v397_v14  ;;  %2686 = vmatprep.mubr.msk.f32.mxu0 %vm2714_vm0, %v2713_v0  ;;  %v2410_v37 = vld [vmem:[%s4394_s3 + $0x270] sm:$0xff]  ;;  %v2408_v38 = vld [vmem:[%s4394_s3 + $0x260] sm:$0xff]  ;;  %v2407_v39 = vld [vmem:[%s4394_s3 + $0x258] sm:$0xff] }
  0x18   : > { %451 = vmatpush1.msra.mxu1 %v396_v16  ;;  %669 = vmatprep.subr.mxu0 %v2426_v26  ;;  %v2405_v40 = vld [vmem:[%s4394_s3 + $0x248] sm:$0xff]  ;;  %v2404_v41 = vld [vmem:[%s4394_s3 + $0x240] sm:$0xff]  ;;  %v2402_v42 = vld [vmem:[%s4394_s3 + $0x230] sm:$0xff] }
  0x19   : > { %452 = vmatprep.subr.mxu1 %v395_v17  ;;  %670 = vmatpush1.msra.mxu0 %v2425_v27  ;;  %v2401_v43 = vld [vmem:[%s4394_s3 + $0x228] sm:$0xff]  ;;  %v2399_v44 = vld [vmem:[%s4394_s3 + $0x218] sm:$0xff]  ;;  %v2398_v45 = vld [vmem:[%s4394_s3 + $0x210] sm:$0xff] }
  0x1a   : > { %453 = vmatpush1.msra.mxu1 %v394_v18  ;;  %2687 = vmatmul.mubr.msk.f32.gmra.mxu0 %vm286_vm1, %v281_v20  ;;  %v2396_v46 = vld [vmem:[%s4394_s3 + $0x200] sm:$0xff]  ;;  %v2395_v47 = vld [vmem:[%s4394_s3 + $0x1f8] sm:$0xff]  ;;  %v2430_v48 = vld [vmem:[%s4394_s3 + $0x310] sm:$0xff] }
  0x1b   : > { %454 = vmatprep.subr.mxu1 %v393_v19  ;;  %2689 = vmatprep.mubr.msk.f32.mxu0 %vm2714_vm0, %v2713_v0  ;;  %v2427_v50 = vld [vmem:[%s4394_s3 + $0x2f8] sm:$0xff]  ;;  %v2424_v52 = vld [vmem:[%s4394_s3 + $0x2e0] sm:$0xff]  ;;  %v2421_v54 = vld [vmem:[%s4394_s3 + $0x2c8] sm:$0xff] }
  0x1c   : > { %455 = vmatpush1.msra.mxu1 %v392_v23  ;;  %671 = vmatprep.subr.mxu0 %v2423_v28  ;;  %v2418_v56 = vld [vmem:[%s4394_s3 + $0x2b0] sm:$0xff]  ;;  %v2415_v58 = vld [vmem:[%s4394_s3 + $0x298] sm:$0xff]  ;;  %v2412_v60 = vld [vmem:[%s4394_s3 + $0x280] sm:$0xff] }
  0x1d   : > { %762 = vmatprep.subr.mxu1 %v2713_v0  ;;  %672 = vmatpush1.msra.mxu0 %v2422_v29  ;;  %v2409_v62 = vld [vmem:[%s4394_s3 + $0x268] sm:$0xff]  ;;  %v2406_v1 = vld [vmem:[%s4394_s3 + $0x250] sm:$0xff]  ;;  %v2403_v3 = vld [vmem:[%s4394_s3 + $0x238] sm:$0xff] }
  0x1e   : > { %2690 = vmatmul.mubr.msk.f32.gmra.mxu0 %vm286_vm1, %v282_v21  ;;  %673 = vmatprep.subr.mxu0 %v2420_v30  ;;  %v2400_v5 = vld [vmem:[%s4394_s3 + $0x220] sm:$0xff]  ;;  %v2397_v6 = vld [vmem:[%s4394_s3 + $0x208] sm:$0xff]  ;;  %v2394_v9 = vld [vmem:[%s4394_s3 + $0x1f0] sm:$0xff] }
  0x1f   : > { %2692 = vmatprep.mubr.msk.f32.mxu0 %vm2714_vm0, %v2713_v0  ;;  %674 = vmatpush1.msra.mxu0 %v2419_v31  ;;  %v2393_v7 = vld [vmem:[%s4394_s3 + $0x1e8] sm:$0xff]  ;;  %v2392_v8 = vld [vmem:[%s4394_s3 + $0x1e0] sm:$0xff]  ;;  %v2390_v10 = vld [vmem:[%s4394_s3 + $0x1d0] sm:$0xff] }
  0x20   : > { %675 = vmatprep.subr.mxu0 %v2417_v32  ;;  %v2389_v11 = vld [vmem:[%s4394_s3 + $0x1c8] sm:$0xff]  ;;  %v2391_v12 = vld [vmem:[%s4394_s3 + $0x1d8] sm:$0xff]  ;;  %v2386_v14 = vld [vmem:[%s4394_s3 + $0x1b0] sm:$0xff] }
  0x21   : > { %676 = vmatpush1.msra.mxu0 %v2416_v33  ;;  %v2387_v13 = vld [vmem:[%s4394_s3 + $0x1b8] sm:$0xff]  ;;  %v2388_v15 = vld [vmem:[%s4394_s3 + $0x1c0] sm:$0xff]  ;;  %v2385_v18 = vld [vmem:[%s4394_s3 + $0x1a8] sm:$0xff] }
  0x22   : > { %2693 = vmatmul.mubr.msk.f32.gmra.mxu0 %vm286_vm1, %v283_v22  ;;  %677 = vmatprep.subr.mxu0 %v2414_v34  ;;  %v2384_v16 = vld [vmem:[%s4394_s3 + $0x1a0] sm:$0xff]  ;;  %v2383_v17 = vld [vmem:[%s4394_s3 + $0x198] sm:$0xff]  ;;  %v2433_v21 = vld [vmem:[%s4394_s3 + $0x328] sm:$0xff] }
  0x23   : > { %678 = vmatpush1.msra.mxu0 %v2413_v35  ;;  %v2432_v19 = vld [vmem:[%s4394_s3 + $0x320] sm:$0xff]  ;;  %v2431_v20 = vld [vmem:[%s4394_s3 + $0x318] sm:$0xff]  ;;  %v565_v22 = vld [vmem:[%s4394_s3 + $0x170] sm:$0xff] }
  0x24   : > { %679 = vmatprep.subr.mxu0 %v2411_v36 }
  0x25   : > { %680 = vmatpush1.msra.mxu0 %v2410_v37 }
  0x26   : > { %681 = vmatprep.subr.mxu0 %v2408_v38 }
  0x27   : > { %682 = vmatpush1.msra.mxu0 %v2407_v39  ;;  %v564_v39 = vld [vmem:[%s4394_s3 + $0x168] sm:$0xff] }
  0x28   : > { %683 = vmatprep.subr.mxu0 %v2405_v40  ;;  %v566_v40 = vld [vmem:[%s4394_s3 + $0x178] sm:$0xff] }
  0x29   : > { %684 = vmatpush1.msra.mxu0 %v2404_v41 }
  0x2a   : > { %685 = vmatprep.subr.mxu0 %v2402_v42 }
  0x2b   : > { %686 = vmatpush1.msra.mxu0 %v2401_v43 }
  0x2c   : > { %687 = vmatprep.subr.mxu0 %v2399_v44  ;;  %v562_v44 = vld [vmem:[%s4394_s3 + $0x158] sm:$0xff] }
  0x2d   : > { %688 = vmatpush1.msra.mxu0 %v2398_v45 }
  0x2e   : > { %689 = vmatprep.subr.mxu0 %v2396_v46 }
  0x2f   : > { %690 = vmatpush1.msra.mxu0 %v2395_v47  ;;  %v561_v47 = vld [vmem:[%s4394_s3 + $0x150] sm:$0xff] }
  0x30   : > { %691 = vmatprep.subr.mxu0 %v2393_v7 }
  0x31   : > { %692 = vmatpush1.msra.mxu0 %v2392_v8 }
  0x32   : > { %693 = vmatprep.subr.mxu0 %v2390_v10 }
  0x33   : > { %694 = vmatpush1.msra.mxu0 %v2389_v11 }
  0x34   : > { %695 = vmatprep.subr.mxu0 %v2387_v13  ;;  %v552_v13 = vld [vmem:[%s4394_s3 + $0x108] sm:$0xff] }
  0x35   : > { %696 = vmatpush1.msra.mxu0 %v2386_v14  ;;  %v554_v14 = vld [vmem:[%s4394_s3 + $0x118] sm:$0xff] }
  0x36   : > { %697 = vmatprep.subr.mxu0 %v2384_v16  ;;  %v550_v16 = vld [vmem:[%s4394_s3 + $0xf8] sm:$0xff] }
  0x37   : > { %698 = vmatpush1.msra.mxu0 %v2383_v17  ;;  %v549_v17 = vld [vmem:[%s4394_s3 + $0xf0] sm:$0xff] }
  0x38   : > { %729 = vmatprep.subr.mxu0 %v2432_v19 }
  0x39   : > { %730 = vmatpush2.msra.mxu0 %v2431_v20  ;;  %v547_v20 = vld [vmem:[%s4394_s3 + $0xe0] sm:$0xff] }
  0x3a   : > { %862 = vmatprep.subr.mxu0 %v565_v22  ;;  %v546_v22 = vld [vmem:[%s4394_s3 + $0xd8] sm:$0xff] }
  0xd2   : > { %v368_v49 = vpop.f32.mrf.mxu0 }
  0xd3   : > { %2378 = vmatmul.mubr.msk.f32.vlgmr.msra.gmra.mxu1 %vm408_vm2, %v368_v49 }
  0xd4   : > { %v2682_v51 = vpop.f32.mrf.mxu0  ;;  %494 = vmatprep.mubr.f32.mxu1 %v2713_v0  ;;  %763 = vmatpush1.msra.mxu1 %v2430_v48  ;;  %v563_v48 = vld [vmem:[%s4394_s3 + $0x160] sm:$0xff] }
  0xd5   : > { %764 = vmatprep.subr.mxu1 %v2713_v0 }
  0xd6   : > { %v373_v53 = vpop.f32.mrf.mxu0  ;;  %765 = vmatpush1.msra.mxu1 %v2427_v50 }
  0xd7   : > { %2379 = vmatmul.mubr.msk.f32.gmra.mxu1 %vm408_vm2, %v373_v53  ;;  %766 = vmatprep.subr.mxu1 %v2713_v0 }
  0xd8   : > { %v2685_v55 = vpop.f32.mrf.mxu0  ;;  %500 = vmatprep.mubr.f32.mxu1 %v2713_v0  ;;  %767 = vmatpush1.msra.mxu1 %v2424_v52 }
  0xd9   : > { %768 = vmatprep.subr.mxu1 %v2713_v0 }
  0xda   : > { %v378_v57 = vpop.f32.mrf.mxu0  ;;  %769 = vmatpush1.msra.mxu1 %v2421_v54  ;;  %v559_v54 = vld [vmem:[%s4394_s3 + $0x140] sm:$0xff] }
  0xdb   : > { %2380 = vmatmul.mubr.msk.f32.gmra.mxu1 %vm408_vm2, %v378_v57  ;;  %770 = vmatprep.subr.mxu1 %v2713_v0 }
  0xdc   : > { %v2688_v59 = vpop.f32.mrf.mxu0  ;;  %506 = vmatprep.mubr.f32.mxu1 %v2713_v0  ;;  %771 = vmatpush1.msra.mxu1 %v2418_v56 }
  0xdd   : > { %772 = vmatprep.subr.mxu1 %v2713_v0  ;;  %v558_v59 = vld [vmem:[%s4394_s3 + $0x138] sm:$0xff] }
  0xde   : > { %v383_v61 = vpop.f32.mrf.mxu0  ;;  %773 = vmatpush1.msra.mxu1 %v2415_v58 }
  0xdf   : > { %2381 = vmatmul.mubr.msk.f32.gmra.mxu1 %vm408_vm2, %v383_v61  ;;  %774 = vmatprep.subr.mxu1 %v2713_v0 }
  0xe0   : > { %v2691_v63 = vpop.f32.mrf.mxu0  ;;  %512 = vmatprep.mubr.f32.mxu1 %v2713_v0  ;;  %775 = vmatpush1.msra.mxu1 %v2412_v60  ;;  %v560_v60 = vld [vmem:[%s4394_s3 + $0x148] sm:$0xff] }
  0xe1   : > { %776 = vmatprep.subr.mxu1 %v2713_v0 }
  0xe2   : > { %v388_v2 = vpop.f32.mrf.mxu0  ;;  %777 = vmatpush1.msra.mxu1 %v2409_v62 }
  0xe3   : > { %2382 = vmatmul.mubr.msk.f32.gmra.mxu1 %vm408_vm2, %v388_v2  ;;  %778 = vmatprep.subr.mxu1 %v2713_v0  ;;  %v556_v2 = vld [vmem:[%s4394_s3 + $0x128] sm:$0xff] }
  0xe4   : > { %v2694_v4 = vpop.f32.mrf.mxu0  ;;  %779 = vmatpush1.msra.mxu1 %v2406_v1 }
  0xe5   : > { %780 = vmatprep.subr.mxu1 %v2713_v0  ;;  %v555_v4 = vld [vmem:[%s4394_s3 + $0x120] sm:$0xff] }
  0xe6   : > { %781 = vmatpush1.msra.mxu1 %v2403_v3 }
  0xe7   : > { %782 = vmatprep.subr.mxu1 %v2713_v0 }
  0xe8   : > { %783 = vmatpush1.msra.mxu1 %v2400_v5  ;;  %v557_v5 = vld [vmem:[%s4394_s3 + $0x130] sm:$0xff] }
  0xe9   : > { %784 = vmatprep.subr.mxu1 %v2713_v0 }
  0xea   : > { %785 = vmatpush1.msra.mxu1 %v2397_v6 }
  0xeb   : > { %786 = vmatprep.subr.mxu1 %v2713_v0 }
  0xec   : > { %787 = vmatpush1.msra.mxu1 %v2394_v9  ;;  %v553_v9 = vld [vmem:[%s4394_s3 + $0x110] sm:$0xff] }
  0xed   : > { %788 = vmatprep.subr.mxu1 %v2713_v0 }
  0xee   : > { %789 = vmatpush1.msra.mxu1 %v2391_v12 }
  0xef   : > { %790 = vmatprep.subr.mxu1 %v2713_v0 }
  0xf0   : > { %791 = vmatpush1.msra.mxu1 %v2388_v15 }
  0xf1   : > { %792 = vmatprep.subr.mxu1 %v2713_v0 }
  0xf2   : > { %793 = vmatpush1.msra.mxu1 %v2385_v18  ;;  %v551_v18 = vld [vmem:[%s4394_s3 + $0x100] sm:$0xff] }
  0xf3   : > { %824 = vmatprep.subr.mxu1 %v2713_v0 }
  0xf4   : > { %825 = vmatpush2.msra.mxu1 %v2433_v21 }
  0xf5   : > { %957 = vmatprep.subr.mxu1 %v2713_v0 }
 0x193   : > { %v3033_v23 = vpop.f32.mrf.mxu1 }
 0x194   : > { %v1100_v26 = vrot.slane %v3033_v23, 2  ;;  %v633_v35 = vrot.slane %v3033_v23, 1 }
 0x195   : > { %v3035_v24 = vpop.f32.mrf.mxu1 }
 0x196   : > { %v636_v28 = vrot.slane %v3035_v24, 1  ;;  %v1103_v31 = vrot.slane %v3035_v24, 2 }
 0x197   : > { %v3037_v25 = vpop.f32.mrf.mxu1 }
 0x198   : > { %v1101_v27 = vrot.slane %v3037_v25, 2  ;;  %v634_v29 = vrot.slane %v3037_v25, 1 }
 0x199   : > { %v3043_v30 = vpop.f32.mrf.mxu1 }
 0x19a   : > { %v637_v32 = vrot.slane %v3043_v30, 1  ;;  %v1104_v33 = vrot.slane %v3043_v30, 2  ;;  %v3049_v34 = vsel %vm1099_vm3, %v1100_v26, %v1101_v27  ;;  %v635_v43 = vsel %vm632_vm4, %v633_v35, %v634_v29  ;;  %v548_v26 = vld [vmem:[%s4394_s3 + $0xe8] sm:$0xff]  ;;  %v538_v35 = vld [vmem:[%s4394_s3 + $0x98] sm:$0xff] }
 0x19b   : > { %v3052_v36 = vpop.f32.mrf.mxu1 }
 0x19c   : > { %v1106_v37 = vrot.slane %v3052_v36, 2  ;;  %v638_v38 = vsel %vm632_vm4, %v636_v28, %v637_v32  ;;  %v3063_v41 = vsel %vm1099_vm3, %v1103_v31, %v1104_v33  ;;  %v639_v50 = vrot.slane %v3052_v36, 1  ;;  %v543_v28 = vld [vmem:[%s4394_s3 + $0xc0] sm:$0xff]  ;;  %v541_v31 = vld [vmem:[%s4394_s3 + $0xb0] sm:$0xff] }
 0x19d   : > { %v3065_v42 = vpop.f32.mrf.mxu1  ;;  %2434 = vmatprep.mubr.msk.f32.mxu0 %vm656_vm5, %v638_v38  ;;  %2439 = vmatprep.mubr.msk.f32.mxu1 %vm656_vm5, %v638_v38  ;;  %v539_v38 = vld [vmem:[%s4394_s3 + $0xa0] sm:$0xff] }
 0x19e   : > { %v641_v45 = vrot.slane %v3065_v42, 1  ;;  %v1108_v46 = vrot.slane %v3065_v42, 2  ;;  %732 = vmatmul.mubr.f32.vlgmr.msra.gmra.mxu0 %v635_v43  ;;  %827 = vmatmul.mubr.f32.vlgmr.msra.gmra.mxu1 %v635_v43  ;;  %v3082_v49 = vsel %vm1099_vm3, %v1101_v27, %v1106_v37  ;;  %v640_v63 = vsel %vm632_vm4, %v634_v29, %v639_v50  ;;  %v544_v27 = vld [vmem:[%s4394_s3 + $0xc8] sm:$0xff]  ;;  %v545_v29 = vld [vmem:[%s4394_s3 + $0xd0] sm:$0xff] }
 0x19f   : > { %863 = vmatpush1.msra.mxu0 %v564_v39  ;;  %958 = vmatpush1.msra.mxu1 %v566_v40  ;;  %v3085_v51 = vpop.f32.mrf.mxu1  ;;  %v535_v39 = vld [vmem:[%s4394_s3 + $0x80] sm:$0xff]  ;;  %v534_v40 = vld [vmem:[%s4394_s3 + $0x78] sm:$0xff]  ;;  %v536_v43 = vld [vmem:[%s4394_s3 + $0x88] sm:$0xff] }
 0x1a0   : > { %v1110_v52 = vrot.slane %v3085_v51, 2  ;;  %864 = vmatprep.subr.mxu0 %v562_v44  ;;  %959 = vmatprep.subr.mxu1 %v2713_v0  ;;  %v642_v53 = vsel %vm632_vm4, %v637_v32, %v641_v45  ;;  %v3094_v55 = vsel %vm1099_vm3, %v1104_v33, %v1108_v46  ;;  %v643_v62 = vrot.slane %v3085_v51, 1  ;;  %v540_v32 = vld [vmem:[%s4394_s3 + $0xa8] sm:$0xff]  ;;  %v542_v33 = vld [vmem:[%s4394_s3 + $0xb8] sm:$0xff] }
 0x1a1   : > { %865 = vmatpush1.msra.mxu0 %v561_v47  ;;  %960 = vmatpush1.msra.mxu1 %v563_v48  ;;  %v3096_v56 = vpop.f32.mrf.mxu1  ;;  %v532_v44 = vld [vmem:[%s4394_s3 + $0x68] sm:$0xff]  ;;  %v530_v48 = vld [vmem:[%s4394_s3 + $0x58] sm:$0xff] }
 0x1a2   : > { %v645_v57 = vrot.slane %v3096_v56, 1  ;;  %v1112_v58 = vrot.slane %v3096_v56, 2  ;;  %2435 = vmatprep.mubr.msk.f32.mxu0 %vm656_vm5, %v642_v53  ;;  %2440 = vmatprep.mubr.msk.f32.mxu1 %vm656_vm5, %v642_v53  ;;  %v3109_v61 = vsel %vm1099_vm3, %v1106_v37, %v1110_v52  ;;  %v644_v12 = vsel %vm632_vm4, %v639_v50, %v643_v62  ;;  %v537_v37 = vld [vmem:[%s4394_s3 + $0x90] sm:$0xff]  ;;  %v528_v47 = vld [vmem:[%s4394_s3 + $0x48] sm:$0xff]  ;;  %v526_v50 = vld [vmem:[%s4394_s3 + $0x38] sm:$0xff] }
 0x1a3   : > { %866 = vmatprep.subr.mxu0 %v559_v54  ;;  %961 = vmatprep.subr.mxu1 %v2713_v0  ;;  %v3114_v1 = vpop.f32.mrf.mxu1  ;;  %v527_v53 = vld [vmem:[%s4394_s3 + $0x40] sm:$0xff] }
 0x1a4   : > { %738 = vmatmul.mubr.f32.gmra.mxu0 %v640_v63  ;;  %832 = vmatmul.mubr.f32.gmra.mxu1 %v640_v63  ;;  %v3120_v3 = vrot.slane %v3114_v1, 2  ;;  %v3131_v6 = vsel %vm1099_vm3, %v1108_v46, %v1112_v58  ;;  %v646_v8 = vsel %vm632_vm4, %v641_v45, %v645_v57  ;;  %v647_v15 = vrot.slane %v3114_v1, 1  ;;  %v533_v45 = vld [vmem:[%s4394_s3 + $0x70] sm:$0xff]  ;;  %v523_v54 = vld [vmem:[%s4394_s3 + $0x20] sm:$0xff] }
 0x1a5   : > { %867 = vmatpush1.msra.mxu0 %v558_v59  ;;  %962 = vmatpush1.msra.mxu1 %v560_v60  ;;  %v3133_v7 = vpop.f32.mrf.mxu1  ;;  %v529_v46 = vld [vmem:[%s4394_s3 + $0x50] sm:$0xff]  ;;  %v524_v59 = vld [vmem:[%s4394_s3 + $0x28] sm:$0xff] }
 0x1a6   : > { %868 = vmatprep.subr.mxu0 %v556_v2  ;;  %963 = vmatprep.subr.mxu1 %v2713_v0  ;;  %v3142_v10 = vsel %vm1099_vm3, %v1110_v52, %v3120_v3  ;;  %v649_v11 = vrot.slane %v3133_v7, 1  ;;  %v648_v21 = vsel %vm632_vm4, %v643_v62, %v647_v15  ;;  %v525_v52 = vld [vmem:[%s4394_s3 + $0x30] sm:$0xff]  ;;  %v520_v60 = vld [vmem:[%s4394_s3 + $0x8] sm:$0xff]  ;;  %v519_v62 = vld [vmem:[%s4394_s3] sm:$0xff] }
 0x1a7   : > { %869 = vmatpush1.msra.mxu0 %v555_v4  ;;  %964 = vmatpush1.msra.mxu1 %v557_v5  ;;  %v521_v63 = vld [vmem:[%s4394_s3 + $0x10] sm:$0xff]  ;;  %v568_v2 = vld [vmem:[%s4394_s3 + $0x188] sm:$0xff]  ;;  %v567_v4 = vld [vmem:[%s4394_s3 + $0x180] sm:$0xff] }
 0x1a8   : > { %2436 = vmatprep.mubr.msk.f32.mxu0 %vm656_vm5, %v646_v8  ;;  %2441 = vmatprep.mubr.msk.f32.mxu1 %vm656_vm5, %v646_v8  ;;  %v650_v19 = vsel %vm632_vm4, %v645_v57, %v649_v11  ;;  %v522_v57 = vld [vmem:[%s4394_s3 + $0x18] sm:$0xff]  ;;  %v569_v5 = vld [vmem:[%s4394_s3 + $0x190] sm:$0xff]  ;;  %v2500_v8 = vld [vmem:[%s4394_s3 + $0x4a0] sm:$0xff] }
 0x1a9   : > { %870 = vmatprep.subr.mxu0 %v553_v9  ;;  %965 = vmatprep.subr.mxu1 %v2713_v0  ;;  %v2499_v9 = vld [vmem:[%s4394_s3 + $0x498] sm:$0xff] }
 0x1aa   : > { %744 = vmatmul.mubr.f32.gmra.mxu0 %v644_v12  ;;  %837 = vmatmul.mubr.f32.gmra.mxu1 %v644_v12  ;;  %v2497_v12 = vld [vmem:[%s4394_s3 + $0x488] sm:$0xff] }
 0x1ab   : > { %871 = vmatpush1.msra.mxu0 %v552_v13  ;;  %966 = vmatpush1.msra.mxu1 %v554_v14  ;;  %v2498_v13 = vld [vmem:[%s4394_s3 + $0x490] sm:$0xff] }
 0x1ac   : > { %872 = vmatprep.subr.mxu0 %v550_v16  ;;  %967 = vmatprep.subr.mxu1 %v2713_v0  ;;  %v2494_v14 = vld [vmem:[%s4394_s3 + $0x470] sm:$0xff]  ;;  %v2491_v16 = vld [vmem:[%s4394_s3 + $0x458] sm:$0xff] }
 0x1ad   : > { %873 = vmatpush1.msra.mxu0 %v549_v17  ;;  %968 = vmatpush1.msra.mxu1 %v551_v18  ;;  %v2492_v17 = vld [vmem:[%s4394_s3 + $0x460] sm:$0xff] }
 0x1ae   : > { %2437 = vmatprep.mubr.msk.f32.mxu0 %vm656_vm5, %v650_v19  ;;  %2442 = vmatprep.mubr.msk.f32.mxu1 %vm656_vm5, %v650_v19  ;;  %v2488_v18 = vld [vmem:[%s4394_s3 + $0x440] sm:$0xff]  ;;  %v2489_v19 = vld [vmem:[%s4394_s3 + $0x448] sm:$0xff] }
 0x1af   : > { %874 = vmatprep.subr.mxu0 %v547_v20  ;;  %969 = vmatprep.subr.mxu1 %v2713_v0  ;;  %v2485_v20 = vld [vmem:[%s4394_s3 + $0x428] sm:$0xff] }
 0x1b0   : > { %750 = vmatmul.mubr.f32.gmra.mxu0 %v648_v21  ;;  %842 = vmatmul.mubr.f32.gmra.mxu1 %v648_v21  ;;  %v2486_v21 = vld [vmem:[%s4394_s3 + $0x430] sm:$0xff] }
 0x1b1   : > { %875 = vmatpush1.msra.mxu0 %v546_v22  ;;  %970 = vmatpush1.msra.mxu1 %v548_v26  ;;  %v2482_v22 = vld [vmem:[%s4394_s3 + $0x410] sm:$0xff]  ;;  %v2481_v26 = vld [vmem:[%s4394_s3 + $0x408] sm:$0xff] }
 0x1b2   : > { %876 = vmatprep.subr.mxu0 %v544_v27  ;;  %971 = vmatprep.subr.mxu1 %v2713_v0  ;;  %v2483_v27 = vld [vmem:[%s4394_s3 + $0x418] sm:$0xff] }
 0x1b3   : > { %877 = vmatpush1.msra.mxu0 %v543_v28  ;;  %972 = vmatpush1.msra.mxu1 %v545_v29  ;;  %v2479_v28 = vld [vmem:[%s4394_s3 + $0x3f8] sm:$0xff]  ;;  %v2480_v29 = vld [vmem:[%s4394_s3 + $0x400] sm:$0xff] }
 0x1b4   : > { %2438 = vmatprep.mubr.msk.f32.mxu0 %vm656_vm5, %v649_v11  ;;  %2443 = vmatprep.mubr.msk.f32.mxu1 %vm656_vm5, %v649_v11  ;;  %v2501_v11 = vld [vmem:[%s4394_s3 + $0x4a8] sm:$0xff] }
 0x1b5   : > { %878 = vmatprep.subr.mxu0 %v541_v31  ;;  %973 = vmatprep.subr.mxu1 %v2713_v0  ;;  %v2476_v31 = vld [vmem:[%s4394_s3 + $0x3e0] sm:$0xff] }
 0x1b6   : > { %756 = vmatmul.mubr.f32.gmra.mxu0 %v647_v15  ;;  %847 = vmatmul.mubr.f32.gmra.mxu1 %v647_v15  ;;  %v2495_v15 = vld [vmem:[%s4394_s3 + $0x478] sm:$0xff] }
 0x1b7   : > { %879 = vmatpush1.msra.mxu0 %v540_v32  ;;  %974 = vmatpush1.msra.mxu1 %v542_v33  ;;  %v2475_v32 = vld [vmem:[%s4394_s3 + $0x3d8] sm:$0xff]  ;;  %v2477_v33 = vld [vmem:[%s4394_s3 + $0x3e8] sm:$0xff] }
 0x1b8   : > { %880 = vmatprep.subr.mxu0 %v538_v35  ;;  %2444 = vmatprep.mubr.msk.f32.mxu0 %vm656_vm5, %v3035_v24  ;;  %v2473_v35 = vld [vmem:[%s4394_s3 + $0x3c8] sm:$0xff] }
 0x1b9   : > { %975 = vmatprep.subr.mxu1 %v2713_v0  ;;  %2449 = vmatprep.mubr.msk.f32.mxu1 %vm656_vm5, %v3035_v24  ;;  %v531_v24 = vld [vmem:[%s4394_s3 + $0x60] sm:$0xff] }
 0x1ba   : > { %881 = vmatpush1.msra.mxu0 %v537_v37  ;;  %976 = vmatpush1.msra.mxu1 %v539_v38  ;;  %v2472_v37 = vld [vmem:[%s4394_s3 + $0x3c0] sm:$0xff]  ;;  %v2470_v38 = vld [vmem:[%s4394_s3 + $0x3b0] sm:$0xff] }
 0x1bb   : > { %882 = vmatprep.subr.mxu0 %v535_v39  ;;  %977 = vmatprep.subr.mxu1 %v2713_v0  ;;  %v2469_v39 = vld [vmem:[%s4394_s3 + $0x3a8] sm:$0xff] }
 0x1bc   : > { %883 = vmatpush1.msra.mxu0 %v534_v40  ;;  %978 = vmatpush1.msra.mxu1 %v536_v43  ;;  %v2471_v40 = vld [vmem:[%s4394_s3 + $0x3b8] sm:$0xff]  ;;  %v2466_v43 = vld [vmem:[%s4394_s3 + $0x390] sm:$0xff] }
 0x1bd   : > { %884 = vmatprep.subr.mxu0 %v532_v44  ;;  %979 = vmatprep.subr.mxu1 %v2713_v0  ;;  %v2468_v44 = vld [vmem:[%s4394_s3 + $0x3a0] sm:$0xff] }
 0x1be   : > { %885 = vmatpush1.msra.mxu0 %v531_v24  ;;  %980 = vmatpush1.msra.mxu1 %v533_v45  ;;  %v2464_v24 = vld [vmem:[%s4394_s3 + $0x380] sm:$0xff]  ;;  %v2463_v45 = vld [vmem:[%s4394_s3 + $0x378] sm:$0xff] }
 0x1bf   : > { %886 = vmatprep.subr.mxu0 %v529_v46  ;;  %981 = vmatprep.subr.mxu1 %v2713_v0  ;;  %v2465_v46 = vld [vmem:[%s4394_s3 + $0x388] sm:$0xff] }
 0x1c0   : > { %887 = vmatpush1.msra.mxu0 %v528_v47  ;;  %982 = vmatpush1.msra.mxu1 %v530_v48  ;;  %v2461_v47 = vld [vmem:[%s4394_s3 + $0x368] sm:$0xff]  ;;  %v2460_v48 = vld [vmem:[%s4394_s3 + $0x360] sm:$0xff] }
 0x1c1   : > { %888 = vmatprep.subr.mxu0 %v526_v50  ;;  %983 = vmatprep.subr.mxu1 %v2713_v0  ;;  %v2462_v50 = vld [vmem:[%s4394_s3 + $0x370] sm:$0xff] }
 0x1c2   : > { %889 = vmatpush1.msra.mxu0 %v525_v52  ;;  %984 = vmatpush1.msra.mxu1 %v527_v53  ;;  %v2458_v52 = vld [vmem:[%s4394_s3 + $0x350] sm:$0xff]  ;;  %v2457_v53 = vld [vmem:[%s4394_s3 + $0x348] sm:$0xff] }
 0x1c3   : > { %890 = vmatprep.subr.mxu0 %v523_v54  ;;  %985 = vmatprep.subr.mxu1 %v2713_v0  ;;  %v2459_v54 = vld [vmem:[%s4394_s3 + $0x358] sm:$0xff] }
 0x1c4   : > { %891 = vmatpush1.msra.mxu0 %v522_v57  ;;  %986 = vmatpush1.msra.mxu1 %v524_v59  ;;  %v2455_v57 = vld [vmem:[%s4394_s3 + $0x338] sm:$0xff]  ;;  %v2454_v59 = vld [vmem:[%s4394_s3 + $0x330] sm:$0xff] }
 0x1c5   : > { %892 = vmatprep.subr.mxu0 %v520_v60  ;;  %987 = vmatprep.subr.mxu1 %v2713_v0  ;;  %v2456_v60 = vld [vmem:[%s4394_s3 + $0x340] sm:$0xff] }
 0x1c6   : > { %893 = vmatpush1.msra.mxu0 %v519_v62  ;;  %988 = vmatpush1.msra.mxu1 %v521_v63  ;;  %v2503_v62 = vld [vmem:[%s4394_s3 + $0x4b8] sm:$0xff]  ;;  %v2502_v63 = vld [vmem:[%s4394_s3 + $0x4b0] sm:$0xff] }
 0x1c7   : > { %924 = vmatprep.subr.mxu0 %v568_v2  ;;  %1019 = vmatprep.subr.mxu1 %v2713_v0  ;;  %v2504_v2 = vld [vmem:[%s4394_s3 + $0x4c0] sm:$0xff] }
 0x1c8   : > { %925 = vmatpush2.msra.mxu0 %v567_v4  ;;  %1020 = vmatpush2.msra.mxu1 %v569_v5  ;;  %v2546_v4 = vld [vmem:[%s4396_s5 + $0x318] sm:$0xff]  ;;  %v2545_v5 = vld [vmem:[%s4396_s5 + $0x310] sm:$0xff] }
 0x1c9   : > { %927 = vmatmul.mubr.f32.vlgmr.msra.gmra.mxu0 %v3033_v23  ;;  %1022 = vmatmul.mubr.f32.vlgmr.msra.gmra.mxu1 %v3033_v23  ;;  %v2496_v23 = vld [vmem:[%s4394_s3 + $0x480] sm:$0xff] }
 0x1ca   : > { %1133 = vmatprep.subr.mxu0 %v2500_v8  ;;  %1228 = vmatprep.subr.mxu1 %v2713_v0  ;;  %v2544_v8 = vld [vmem:[%s4396_s5 + $0x308] sm:$0xff] }
 0x1cb   : > { %2445 = vmatprep.mubr.msk.f32.mxu0 %vm656_vm5, %v3043_v30  ;;  %2450 = vmatprep.mubr.msk.f32.mxu1 %vm656_vm5, %v3043_v30  ;;  %v2493_v30 = vld [vmem:[%s4394_s3 + $0x468] sm:$0xff] }
 0x1cc   : > { %1134 = vmatpush1.msra.mxu0 %v2499_v9  ;;  %1229 = vmatpush1.msra.mxu1 %v2501_v11  ;;  %v1116_v9 = vrot.slane %v3133_v7, 2  ;;  %v2535_v11 = vld [vmem:[%s4396_s5 + $0x2c0] sm:$0xff] }
 0x1cd   : > { %1135 = vmatprep.subr.mxu0 %v2497_v12  ;;  %1230 = vmatprep.subr.mxu1 %v2713_v0  ;;  %v2534_v12 = vld [vmem:[%s4396_s5 + $0x2b8] sm:$0xff] }
 0x1ce   : > { %1136 = vmatpush1.msra.mxu0 %v2496_v23  ;;  %1231 = vmatpush1.msra.mxu1 %v2498_v13  ;;  %v2532_v23 = vld [vmem:[%s4396_s5 + $0x2a8] sm:$0xff]  ;;  %v2531_v13 = vld [vmem:[%s4396_s5 + $0x2a0] sm:$0xff] }
 0x1cf   : > { %933 = vmatmul.mubr.f32.gmra.mxu0 %v3037_v25  ;;  %1027 = vmatmul.mubr.f32.gmra.mxu1 %v3037_v25  ;;  %v2490_v25 = vld [vmem:[%s4394_s3 + $0x450] sm:$0xff] }
 0x1d0   : > { %1137 = vmatprep.subr.mxu0 %v2494_v14  ;;  %1232 = vmatprep.subr.mxu1 %v2713_v0  ;;  %v2530_v14 = vld [vmem:[%s4396_s5 + $0x298] sm:$0xff] }
 0x1d1   : > { %2446 = vmatprep.mubr.msk.f32.mxu0 %vm656_vm5, %v3065_v42  ;;  %2451 = vmatprep.mubr.msk.f32.mxu1 %vm656_vm5, %v3065_v42  ;;  %v2487_v42 = vld [vmem:[%s4394_s3 + $0x438] sm:$0xff] }
 0x1d2   : > { %1138 = vmatpush1.msra.mxu0 %v2493_v30  ;;  %1233 = vmatpush1.msra.mxu1 %v2495_v15  ;;  %v2529_v30 = vld [vmem:[%s4396_s5 + $0x290] sm:$0xff]  ;;  %v2528_v15 = vld [vmem:[%s4396_s5 + $0x288] sm:$0xff] }
 0x1d3   : > { %1139 = vmatprep.subr.mxu0 %v2491_v16  ;;  %1234 = vmatprep.subr.mxu1 %v2713_v0  ;;  %v2527_v16 = vld [vmem:[%s4396_s5 + $0x280] sm:$0xff] }
 0x1d4   : > { %1140 = vmatpush1.msra.mxu0 %v2490_v25  ;;  %1235 = vmatpush1.msra.mxu1 %v2492_v17  ;;  %v2526_v25 = vld [vmem:[%s4396_s5 + $0x278] sm:$0xff]  ;;  %v2525_v17 = vld [vmem:[%s4396_s5 + $0x270] sm:$0xff] }
 0x1d5   : > { %939 = vmatmul.mubr.f32.gmra.mxu0 %v3052_v36  ;;  %1032 = vmatmul.mubr.f32.gmra.mxu1 %v3052_v36  ;;  %v2484_v36 = vld [vmem:[%s4394_s3 + $0x420] sm:$0xff] }
 0x1d6   : > { %1141 = vmatprep.subr.mxu0 %v2488_v18  ;;  %1236 = vmatprep.subr.mxu1 %v2713_v0  ;;  %v2524_v18 = vld [vmem:[%s4396_s5 + $0x268] sm:$0xff] }
 0x1d7   : > { %2447 = vmatprep.mubr.msk.f32.mxu0 %vm656_vm5, %v3096_v56  ;;  %2452 = vmatprep.mubr.msk.f32.mxu1 %vm656_vm5, %v3096_v56  ;;  %v2539_v56 = vld [vmem:[%s4396_s5 + $0x2e0] sm:$0xff] }
 0x1d8   : > { %1142 = vmatpush1.msra.mxu0 %v2487_v42  ;;  %1237 = vmatpush1.msra.mxu1 %v2489_v19  ;;  %v2523_v42 = vld [vmem:[%s4396_s5 + $0x260] sm:$0xff]  ;;  %v2522_v19 = vld [vmem:[%s4396_s5 + $0x258] sm:$0xff] }
 0x1d9   : > { %1143 = vmatprep.subr.mxu0 %v2485_v20  ;;  %1238 = vmatprep.subr.mxu1 %v2713_v0  ;;  %v2521_v20 = vld [vmem:[%s4396_s5 + $0x250] sm:$0xff] }
 0x1da   : > { %1144 = vmatpush1.msra.mxu0 %v2484_v36  ;;  %1239 = vmatpush1.msra.mxu1 %v2486_v21  ;;  %v2520_v36 = vld [vmem:[%s4396_s5 + $0x248] sm:$0xff]  ;;  %v2519_v21 = vld [vmem:[%s4396_s5 + $0x240] sm:$0xff] }
 0x1db   : > { %945 = vmatmul.mubr.f32.gmra.mxu0 %v3085_v51  ;;  %1037 = vmatmul.mubr.f32.gmra.mxu1 %v3085_v51  ;;  %v2478_v51 = vld [vmem:[%s4394_s3 + $0x3f0] sm:$0xff] }
 0x1dc   : > { %1145 = vmatprep.subr.mxu0 %v2482_v22  ;;  %1240 = vmatprep.subr.mxu1 %v2713_v0  ;;  %v2518_v22 = vld [vmem:[%s4396_s5 + $0x238] sm:$0xff] }
 0x1dd   : > { %2448 = vmatprep.mubr.msk.f32.mxu0 %vm656_vm5, %v3133_v7  ;;  %2453 = vmatprep.mubr.msk.f32.mxu1 %vm656_vm5, %v3133_v7  ;;  %v2541_v7 = vld [vmem:[%s4396_s5 + $0x2f0] sm:$0xff] }
 0x1de   : > { %1146 = vmatpush1.msra.mxu0 %v2481_v26  ;;  %1241 = vmatpush1.msra.mxu1 %v2483_v27  ;;  %v2517_v26 = vld [vmem:[%s4396_s5 + $0x230] sm:$0xff]  ;;  %v2516_v27 = vld [vmem:[%s4396_s5 + $0x228] sm:$0xff] }
 0x1df   : > { %1147 = vmatprep.subr.mxu0 %v2479_v28  ;;  %1242 = vmatprep.subr.mxu1 %v2713_v0  ;;  %v2515_v28 = vld [vmem:[%s4396_s5 + $0x220] sm:$0xff] }
 0x1e0   : > { %1148 = vmatpush1.msra.mxu0 %v2478_v51  ;;  %1243 = vmatpush1.msra.mxu1 %v2480_v29  ;;  %v2578_v51 = vld [vmem:[%s4396_s5 + $0x418] sm:$0xff]  ;;  %v2577_v29 = vld [vmem:[%s4396_s5 + $0x410] sm:$0xff] }
 0x1e1   : > { %951 = vmatmul.mubr.f32.gmra.mxu0 %v3114_v1  ;;  %1042 = vmatmul.mubr.f32.gmra.mxu1 %v3114_v1  ;;  %v2474_v1 = vld [vmem:[%s4394_s3 + $0x3d0] sm:$0xff] }
 0x1e2   : > { %1149 = vmatprep.subr.mxu0 %v2476_v31  ;;  %1244 = vmatprep.subr.mxu1 %v2713_v0  ;;  %v2576_v31 = vld [vmem:[%s4396_s5 + $0x408] sm:$0xff] }
 0x1e3   : > { %1150 = vmatpush1.msra.mxu0 %v2475_v32  ;;  %2505 = vmatprep.mubr.msk.f32.mxu0 %vm656_vm5, %v3063_v41  ;;  %v2575_v32 = vld [vmem:[%s4396_s5 + $0x400] sm:$0xff] }
 0x1e4   : > { %1245 = vmatpush1.msra.mxu1 %v2477_v33  ;;  %2510 = vmatprep.mubr.msk.f32.mxu1 %vm656_vm5, %v3063_v41  ;;  %v2467_v41 = vld [vmem:[%s4394_s3 + $0x398] sm:$0xff] }
 0x1e5   : > { %1151 = vmatprep.subr.mxu0 %v2473_v35  ;;  %1246 = vmatprep.subr.mxu1 %v2713_v0  ;;  %v2574_v33 = vld [vmem:[%s4396_s5 + $0x3f8] sm:$0xff]  ;;  %v2573_v35 = vld [vmem:[%s4396_s5 + $0x3f0] sm:$0xff] }
 0x1e6   : > { %1152 = vmatpush1.msra.mxu0 %v2472_v37  ;;  %1247 = vmatpush1.msra.mxu1 %v2474_v1  ;;  %v2582_v37 = vld [vmem:[%s4396_s5 + $0x438] sm:$0xff]  ;;  %v2572_v1 = vld [vmem:[%s4396_s5 + $0x3e8] sm:$0xff] }
 0x1e7   : > { %1153 = vmatprep.subr.mxu0 %v2470_v38  ;;  %1248 = vmatprep.subr.mxu1 %v2713_v0  ;;  %v2581_v38 = vld [vmem:[%s4396_s5 + $0x430] sm:$0xff] }
 0x1e8   : > { %1154 = vmatpush1.msra.mxu0 %v2469_v39  ;;  %1249 = vmatpush1.msra.mxu1 %v2471_v40  ;;  %v2571_v39 = vld [vmem:[%s4396_s5 + $0x3e0] sm:$0xff]  ;;  %v2570_v40 = vld [vmem:[%s4396_s5 + $0x3d8] sm:$0xff] }
 0x1e9   : > { %1155 = vmatprep.subr.mxu0 %v2467_v41  ;;  %1250 = vmatprep.subr.mxu1 %v2713_v0  ;;  %v2569_v41 = vld [vmem:[%s4396_s5 + $0x3d0] sm:$0xff] }
 0x1ea   : > { %1156 = vmatpush1.msra.mxu0 %v2466_v43  ;;  %1251 = vmatpush1.msra.mxu1 %v2468_v44  ;;  %v2568_v43 = vld [vmem:[%s4396_s5 + $0x3c8] sm:$0xff]  ;;  %v2567_v44 = vld [vmem:[%s4396_s5 + $0x3c0] sm:$0xff] }
 0x1eb   : > { %1157 = vmatprep.subr.mxu0 %v2464_v24  ;;  %1252 = vmatprep.subr.mxu1 %v2713_v0  ;;  %v2566_v24 = vld [vmem:[%s4396_s5 + $0x3b8] sm:$0xff] }
 0x1ec   : > { %1158 = vmatpush1.msra.mxu0 %v2463_v45  ;;  %1253 = vmatpush1.msra.mxu1 %v2465_v46  ;;  %v2565_v45 = vld [vmem:[%s4396_s5 + $0x3b0] sm:$0xff]  ;;  %v2564_v46 = vld [vmem:[%s4396_s5 + $0x3a8] sm:$0xff] }
 0x1ed   : > { %1159 = vmatprep.subr.mxu0 %v2461_v47  ;;  %1254 = vmatprep.subr.mxu1 %v2713_v0  ;;  %v2563_v47 = vld [vmem:[%s4396_s5 + $0x3a0] sm:$0xff] }
 0x1ee   : > { %1160 = vmatpush1.msra.mxu0 %v2460_v48  ;;  %1255 = vmatpush1.msra.mxu1 %v2462_v50  ;;  %v2562_v48 = vld [vmem:[%s4396_s5 + $0x398] sm:$0xff]  ;;  %v2561_v50 = vld [vmem:[%s4396_s5 + $0x390] sm:$0xff] }
 0x1ef   : > { %1161 = vmatprep.subr.mxu0 %v2458_v52  ;;  %1256 = vmatprep.subr.mxu1 %v2713_v0  ;;  %v2560_v52 = vld [vmem:[%s4396_s5 + $0x388] sm:$0xff] }
 0x1f0   : > { %1162 = vmatpush1.msra.mxu0 %v2457_v53  ;;  %1257 = vmatpush1.msra.mxu1 %v2459_v54  ;;  %v2559_v53 = vld [vmem:[%s4396_s5 + $0x380] sm:$0xff]  ;;  %v2558_v54 = vld [vmem:[%s4396_s5 + $0x378] sm:$0xff] }
 0x1f1   : > { %1163 = vmatprep.subr.mxu0 %v2455_v57  ;;  %1258 = vmatprep.subr.mxu1 %v2713_v0  ;;  %v2557_v57 = vld [vmem:[%s4396_s5 + $0x370] sm:$0xff] }
 0x1f2   : > { %1164 = vmatpush1.msra.mxu0 %v2454_v59  ;;  %1259 = vmatpush1.msra.mxu1 %v2456_v60  ;;  %v2556_v59 = vld [vmem:[%s4396_s5 + $0x368] sm:$0xff]  ;;  %v2555_v60 = vld [vmem:[%s4396_s5 + $0x360] sm:$0xff] }
 0x1f3   : > { %1195 = vmatprep.subr.mxu0 %v2503_v62  ;;  %1290 = vmatprep.subr.mxu1 %v2713_v0  ;;  %v2554_v62 = vld [vmem:[%s4396_s5 + $0x358] sm:$0xff] }
 0x1f4   : > { %1196 = vmatpush2.msra.mxu0 %v2502_v63  ;;  %1291 = vmatpush2.msra.mxu1 %v2504_v2  ;;  %v2553_v63 = vld [vmem:[%s4396_s5 + $0x350] sm:$0xff]  ;;  %v2552_v2 = vld [vmem:[%s4396_s5 + $0x348] sm:$0xff] }
 0x1f5   : > { %1198 = vmatmul.mubr.f32.vlgmr.msra.gmra.mxu0 %v3049_v34  ;;  %1293 = vmatmul.mubr.f32.vlgmr.msra.gmra.mxu1 %v3049_v34  ;;  %v2543_v34 = vld [vmem:[%s4396_s5 + $0x300] sm:$0xff] }
 0x1f6   : > { %2506 = vmatprep.mubr.msk.f32.mxu0 %vm656_vm5, %v3094_v55  ;;  %2511 = vmatprep.mubr.msk.f32.mxu1 %vm656_vm5, %v3094_v55  ;;  %v2542_v55 = vld [vmem:[%s4396_s5 + $0x2f8] sm:$0xff] }
 0x1f7   : > { %1611 = vmatprep.subr.mxu0 %v2546_v4  ;;  %1728 = vmatprep.subr.mxu1 %v2582_v37  ;;  %v2580_v4 = vld [vmem:[%s4396_s5 + $0x428] sm:$0xff] }
 0x1f8   : > { %1612 = vmatpush1.msra.mxu0 %v2545_v5  ;;  %1729 = vmatpush1.msra.mxu1 %v2581_v38  ;;  %v2551_v5 = vld [vmem:[%s4396_s5 + $0x340] sm:$0xff] }
 0x1f9   : > { %1204 = vmatmul.mubr.f32.gmra.mxu0 %v3082_v49  ;;  %1298 = vmatmul.mubr.f32.gmra.mxu1 %v3082_v49  ;;  %v1117_v49 = vsel %vm1099_vm3, %v1112_v58, %v1116_v9  ;;  %v2538_v58 = vld [vmem:[%s4396_s5 + $0x2d8] sm:$0xff] }
 0x1fa   : > { %2507 = vmatprep.mubr.msk.f32.mxu0 %vm656_vm5, %v3131_v6  ;;  %2512 = vmatprep.mubr.msk.f32.mxu1 %vm656_vm5, %v3131_v6  ;;  %v2540_v6 = vld [vmem:[%s4396_s5 + $0x2e8] sm:$0xff] }
 0x1fb   : > { %1613 = vmatprep.subr.mxu0 %v2544_v8  ;;  %1730 = vmatprep.subr.mxu1 %v2580_v4  ;;  %v2579_v8 = vld [vmem:[%s4396_s5 + $0x420] sm:$0xff] }
 0x1fc   : > { %1614 = vmatpush1.msra.mxu0 %v2543_v34  ;;  %1731 = vmatpush1.msra.mxu1 %v2579_v8  ;;  %v2549_v34 = vld [vmem:[%s4396_s5 + $0x330] sm:$0xff] }
 0x1fd   : > { %1210 = vmatmul.mubr.f32.gmra.mxu0 %v3109_v61  ;;  %1303 = vmatmul.mubr.f32.gmra.mxu1 %v3109_v61  ;;  %v2537_v61 = vld [vmem:[%s4396_s5 + $0x2d0] sm:$0xff] }
 0x1fe   : > { %2508 = vmatprep.mubr.msk.f32.mxu0 %vm656_vm5, %v1117_v49  ;;  %2513 = vmatprep.mubr.msk.f32.mxu1 %vm656_vm5, %v1117_v49  ;;  %v2548_v49 = vld [vmem:[%s4396_s5 + $0x328] sm:$0xff] }
 0x1ff   : > { %1615 = vmatprep.subr.mxu0 %v2542_v55  ;;  %v1447_v55 = vld [vmem:[%s4396_s5 + $0xf8] sm:$0xff] }
 0x200   : > { %1616 = vmatpush1.msra.mxu0 %v2541_v7  ;;  %1797 = vmatprep.subr.mxu1 %v1447_v55  ;;  %v2547_v7 = vld [vmem:[%s4396_s5 + $0x320] sm:$0xff] }
 0x201   : > { %1216 = vmatmul.mubr.f32.gmra.mxu0 %v3142_v10  ;;  %1308 = vmatmul.mubr.f32.gmra.mxu1 %v3142_v10  ;;  %v2536_v10 = vld [vmem:[%s4396_s5 + $0x2c8] sm:$0xff] }
 0x202   : > { %2509 = vmatprep.mubr.msk.f32.mxu0 %vm656_vm5, %v1116_v9  ;;  %2514 = vmatprep.mubr.msk.f32.mxu1 %vm656_vm5, %v1116_v9  ;;  %v2550_v9 = vld [vmem:[%s4396_s5 + $0x338] sm:$0xff] }
 0x203   : > { %1617 = vmatprep.subr.mxu0 %v2540_v6  ;;  %v2624_v6 = vld [vmem:[%s4396_s5 + $0x538] sm:$0xff] }
 0x204   : > { %1618 = vmatpush1.msra.mxu0 %v2539_v56 }
 0x205   : > { %1222 = vmatmul.mubr.f32.gmra.mxu0 %v3120_v3  ;;  %1313 = vmatmul.mubr.f32.gmra.mxu1 %v3120_v3  ;;  %v2533_v3 = vld [vmem:[%s4396_s5 + $0x2b0] sm:$0xff] }
 0x206   : > { %1619 = vmatprep.subr.mxu0 %v2538_v58  ;;  %1764 = vmatprep.mubr.f32.mxu1 %v2713_v0 }
 0x207   : > { %1620 = vmatpush1.msra.mxu0 %v2537_v61 }
 0x208   : > { %1621 = vmatprep.subr.mxu0 %v2536_v10 }
 0x209   : > { %1622 = vmatpush1.msra.mxu0 %v2535_v11 }
 0x20a   : > { %1623 = vmatprep.subr.mxu0 %v2534_v12 }
 0x20b   : > { %1624 = vmatpush1.msra.mxu0 %v2533_v3 }
 0x20c   : > { %1625 = vmatprep.subr.mxu0 %v2532_v23 }
 0x20d   : > { %1626 = vmatpush1.msra.mxu0 %v2531_v13 }
 0x20e   : > { %1627 = vmatprep.subr.mxu0 %v2530_v14 }
 0x20f   : > { %1628 = vmatpush1.msra.mxu0 %v2529_v30 }
 0x210   : > { %1629 = vmatprep.subr.mxu0 %v2528_v15 }
 0x211   : > { %1630 = vmatpush1.msra.mxu0 %v2527_v16 }
 0x212   : > { %1631 = vmatprep.subr.mxu0 %v2526_v25 }
 0x213   : > { %1632 = vmatpush1.msra.mxu0 %v2525_v17 }
 0x214   : > { %1633 = vmatprep.subr.mxu0 %v2524_v18 }
 0x215   : > { %1634 = vmatpush1.msra.mxu0 %v2523_v42 }
 0x216   : > { %1635 = vmatprep.subr.mxu0 %v2522_v19 }
 0x217   : > { %1636 = vmatpush1.msra.mxu0 %v2521_v20 }
 0x218   : > { %1637 = vmatprep.subr.mxu0 %v2520_v36 }
 0x219   : > { %1638 = vmatpush1.msra.mxu0 %v2519_v21 }
 0x21a   : > { %1639 = vmatprep.subr.mxu0 %v2518_v22 }
 0x21b   : > { %1640 = vmatpush1.msra.mxu0 %v2517_v26 }
 0x21c   : > { %1641 = vmatprep.subr.mxu0 %v2516_v27 }
 0x21d   : > { %1642 = vmatpush1.msra.mxu0 %v2515_v28 }
 0x21e   : > { %1643 = vmatprep.subr.mxu0 %v2578_v51 }
 0x21f   : > { %1644 = vmatpush2.msra.mxu0 %v2577_v29 }
 0x220   : > { %1645 = vmatprep.subr.mxu0 %v2576_v31 }
 0x221   : > { %1646 = vmatpush2.msra.mxu0 %v2575_v32 }
 0x222   : > { %1647 = vmatprep.subr.mxu0 %v2574_v33 }
 0x223   : > { %1648 = vmatpush2.msra.mxu0 %v2573_v35 }
 0x224   : > { %1649 = vmatprep.subr.mxu0 %v2572_v1 }
 0x225   : > { %1650 = vmatpush2.msra.mxu0 %v2571_v39 }
 0x226   : > { %1651 = vmatprep.subr.mxu0 %v2570_v40 }
 0x227   : > { %1652 = vmatpush2.msra.mxu0 %v2569_v41 }
 0x228   : > { %1653 = vmatprep.subr.mxu0 %v2568_v43  ;;  %v1333_v43 = vlaneseq }
 0x229   : > { %1654 = vmatpush2.msra.mxu0 %v2567_v44 }
 0x22a   : > { %1655 = vmatprep.subr.mxu0 %v2566_v24  ;;  %v3737_v24 = vshrl.u32 %v1333_v43, 7 }
 0x22b   : > { %1656 = vmatpush2.msra.mxu0 %v2565_v45 }
 0x22c   : > { %1657 = vmatprep.subr.mxu0 %v2564_v46  ;;  %v1366_v46 = vsub.s32 2, %v3737_v24  ;;  %vm1339_vm6 = vcmp.ge.s32.totalorder %v3737_v24, 1 }
 0x22d   : > { %1658 = vmatpush2.msra.mxu0 %v2563_v47  ;;  %v1354_v47 = vld [vmem:[%s4395_s4] sm:$0x7] }
 0x22e   : > { %1659 = vmatprep.subr.mxu0 %v2562_v48  ;;  %v1358_v48 = vsub.s32 0, %v3737_v24 }
 0x22f   : > { %1660 = vmatpush2.msra.mxu0 %v2561_v50  ;;  %v1362_v50 = vsub.s32 1, %v3737_v24 }
 0x230   : > { %1661 = vmatprep.subr.mxu0 %v2560_v52 }
 0x231   : > { %1662 = vmatpush2.msra.mxu0 %v2559_v53 }
 0x232   : > { %1663 = vmatprep.subr.mxu0 %v2558_v54 }
 0x233   : > { %1664 = vmatpush2.msra.mxu0 %v2557_v57  ;;  %v3745_v57 = vrot.slane %v1354_v47, %v1366_v46 }
 0x234   : > { %1665 = vmatprep.subr.mxu0 %v2556_v59 }
 0x235   : > { %1666 = vmatpush2.msra.mxu0 %v2555_v60  ;;  %v3749_v60 = vrot.slane %v1354_v47, %v1358_v48 }
 0x236   : > { %1667 = vmatprep.subr.mxu0 %v2554_v62 }
 0x237   : > { %1668 = vmatpush2.msra.mxu0 %v2553_v63 }
 0x238   : > { %1669 = vmatprep.subr.mxu0 %v2552_v2 }
 0x239   : > { %1670 = vmatpush2.msra.mxu0 %v2551_v5  ;;  %v3753_v5 = vrot.slane %v1354_v47, %v1362_v50 }
 0x23a   : > { %1671 = vmatprep.subr.mxu0 %v2550_v9 }
 0x23b   : > { %1672 = vmatpush2.msra.mxu0 %v2549_v34 }
 0x23c   : > { %1673 = vmatprep.subr.mxu0 %v2548_v49 }
 0x23d   : > { %1674 = vmatpush2.msra.mxu0 %v2547_v7 }
 0x23e   : > { %2087 = vmatprep.subr.mxu0 %v2624_v6 }
 0x25e   : > { %v828_v56 = vpop.f32.mrf.mxu1  ;;  %v733_v12 = vpop.f32.mrf.mxu0 }
 0x260   : > { %v830_v58 = vpop.f32.mrf.mxu1  ;;  %v735_v23 = vpop.f32.mrf.mxu0 }
 0x264   : > { %v833_v61 = vpop.f32.mrf.mxu1  ;;  %v739_v30 = vpop.f32.mrf.mxu0 }
 0x266   : > { %v835_v10 = vpop.f32.mrf.mxu1  ;;  %v741_v16 = vpop.f32.mrf.mxu0 }
 0x26a   : > { %v3723_v11 = vpop.f32.mrf.mxu1  ;;  %v745_v17 = vpop.f32.mrf.mxu0 }
 0x26c   : > { %v840_v3 = vpop.f32.mrf.mxu1  ;;  %v747_v18 = vpop.f32.mrf.mxu0 }
 0x26d   : > { %v3764_v3 = vadd.s32 32, %v3737_v24 }
 0x26f   : > { %vm1348_vm7 = vcmp.le.s32.totalorder %v3764_v3, 32  ;;  %v2613_v3 = vld [vmem:[%s4396_s5 + $0x4e0] sm:$0xff] }
 0x270   : > { %v3725_v13 = vpop.f32.mrf.mxu1  ;;  %v3729_v42 = vpop.f32.mrf.mxu0 }
 0x272   : > { %v845_v14 = vpop.f32.mrf.mxu1  ;;  %v3731_v19 = vpop.f32.mrf.mxu0 }
 0x276   : > { %v3727_v15 = vpop.f32.mrf.mxu1  ;;  %v3733_v20 = vpop.f32.mrf.mxu0 }
 0x278   : > { %v850_v25 = vpop.f32.mrf.mxu1  ;;  %v3735_v22 = vpop.f32.mrf.mxu0 }
 0x289   : > { %v1023_v36 = vpop.f32.mrf.mxu1  ;;  %v928_v26 = vpop.f32.mrf.mxu0 }
 0x28a   : > { %v929_v53 = vadd.f32 %v928_v26, %v733_v12  ;;  %v1024_v54 = vadd.f32 %v1023_v36, %v828_v56 }
 0x28b   : > { %v1025_v21 = vpop.f32.mrf.mxu1  ;;  %v930_v51 = vpop.f32.mrf.mxu0 }
 0x28c   : > { %v931_v63 = vadd.f32 %v930_v51, %v735_v23 }
 0x28f   : > { %v1028_v27 = vpop.f32.mrf.mxu1  ;;  %v934_v31 = vpop.f32.mrf.mxu0 }
 0x290   : > { %v935_v34 = vadd.f32 %v934_v31, %v739_v30  ;;  %v1029_v7 = vadd.f32 %v1028_v27, %v833_v61 }
 0x291   : > { %v1030_v28 = vpop.f32.mrf.mxu1  ;;  %v936_v33 = vpop.f32.mrf.mxu0 }
 0x292   : > { %v937_v23 = vadd.f32 %v936_v33, %v741_v16 }
 0x295   : > { %v1033_v29 = vpop.f32.mrf.mxu1  ;;  %v940_v1 = vpop.f32.mrf.mxu0 }
 0x296   : > { %v941_v14 = vadd.f32 %v940_v1, %v745_v17  ;;  %v1034_v21 = vadd.f32 %v1033_v29, %v3723_v11 }
 0x297   : > { %v1035_v32 = vpop.f32.mrf.mxu1  ;;  %v942_v39 = vpop.f32.mrf.mxu0 }
 0x298   : > { %v943_v26 = vadd.f32 %v942_v39, %v747_v18 }
 0x29b   : > { %v1038_v35 = vpop.f32.mrf.mxu1  ;;  %v946_v41 = vpop.f32.mrf.mxu0 }
 0x29c   : > { %v947_v51 = vadd.f32 %v946_v41, %v3729_v42  ;;  %v1039_v31 = vadd.f32 %v1038_v35, %v3725_v13 }
 0x29d   : > { %v1040_v37 = vpop.f32.mrf.mxu1  ;;  %v948_v44 = vpop.f32.mrf.mxu0 }
 0x29e   : > { %v949_v32 = vadd.f32 %v948_v44, %v3731_v19 }
 0x2a1   : > { %v1043_v38 = vpop.f32.mrf.mxu1  ;;  %v952_v45 = vpop.f32.mrf.mxu0 }
 0x2a2   : > { %v953_v37 = vadd.f32 %v952_v45, %v3733_v20  ;;  %v1044_v1 = vadd.f32 %v1043_v38, %v3727_v15 }
 0x2a3   : > { %v1045_v40 = vpop.f32.mrf.mxu1  ;;  %v954_v52 = vpop.f32.mrf.mxu0 }
 0x2a4   : > { %v955_v29 = vadd.f32 %v954_v52, %v3735_v22 }
 0x2b5   : > { %v1199_v59 = vpop.f32.mrf.mxu0  ;;  %v1294_v62 = vpop.f32.mrf.mxu1 }
 0x2b6   : > { %v1318_v2 = vadd.f32 %v1199_v59, %v929_v53  ;;  %v1320_v4 = vadd.f32 %v1294_v62, %v1024_v54 }
 0x2b7   : > { %v1201_v8 = vpop.f32.mrf.mxu0  ;;  %v1296_v9 = vpop.f32.mrf.mxu1 }
 0x2b8   : > { %v1373_v55 = vadd.f32 %v3745_v57, %v1320_v4  ;;  %v1319_v49 = vadd.f32 %v1201_v8, %v931_v63  ;;  %v3757_v6 = vadd.f32 %v3749_v60, %v1318_v2  ;;  %v1446_v9 = vld [vmem:[%s4396_s5 + $0xf0] sm:$0xff] }
 0x2b9   : > { %v1205_v56 = vpop.f32.mrf.mxu0  ;;  %v1299_v58 = vpop.f32.mrf.mxu1 }
 0x2ba   : > { %v3761_v10 = vadd.f32 %v3753_v5, %v1319_v49  ;;  %v1321_v12 = vadd.f32 %v1205_v56, %v935_v34  ;;  %v1388_v30 = vmax.f32 %v1373_v55, 0.0  ;;  %v1323_v25 = vadd.f32 %v1299_v58, %v1029_v7  ;;  %v1445_v7 = vld [vmem:[%s4396_s5 + $0xe8] sm:$0xff] }
 0x2bb   : > { %v1207_v36 = vpop.f32.mrf.mxu0  ;;  %v1301_v61 = vpop.f32.mrf.mxu1  ;;  %v1386_v16 = vmax.f32 %v3757_v6, 0.0 }
 0x2bc   : > { %v1387_v27 = vmax.f32 %v3761_v10, 0.0  ;;  %v1374_v28 = vadd.f32 %v3749_v60, %v1321_v12  ;;  %v1376_v11 = vadd.f32 %v3745_v57, %v1323_v25  ;;  %v1322_v18 = vadd.f32 %v1207_v36, %v937_v23  ;;  %v1444_v36 = vld [vmem:[%s4396_s5 + $0xe0] sm:$0xff] }
 0x2bd   : > { %v1211_v17 = vpop.f32.mrf.mxu0  ;;  %v1304_v33 = vpop.f32.mrf.mxu1  ;;  %v3779_v42 = vsel %vm1339_vm6, %v1388_v30, 0.0  ;;  %v3796_v40 = vsel %vm1339_vm6, %v1386_v16, 0.0 }
 0x2be   : > { %v1324_v13 = vadd.f32 %v1211_v17, %v941_v14  ;;  %v1326_v35 = vadd.f32 %v1304_v33, %v1034_v21  ;;  %v3785_v20 = vsel %vm1339_vm6, %v1387_v27, 0.0  ;;  %v3787_v15 = vmax.f32 %v1374_v28, 0.0  ;;  %v2623_v33 = vld [vmem:[%s4396_s5 + $0x530] sm:$0xff] }
 0x2bf   : > { %v1213_v19 = vpop.f32.mrf.mxu0  ;;  %v1306_v39 = vpop.f32.mrf.mxu1  ;;  %v3789_v38 = vmax.f32 %v1376_v11, 0.0  ;;  %v1375_v22 = vadd.f32 %v3753_v5, %v1322_v18  ;;  %v1574_v47 = vrot.slane %v3779_v42, 1  ;;  %v1571_v59 = vrot.slane %v3785_v20, 1 }
 0x2c0   : > { %v1377_v41 = vadd.f32 %v3749_v60, %v1324_v13  ;;  %v1379_v43 = vadd.f32 %v3745_v57, %v1326_v35  ;;  %v1325_v44 = vadd.f32 %v1213_v19, %v943_v26  ;;  %v1569_v34 = vrot.slane %v3787_v15, 1  ;;  %v1442_v39 = vld [vmem:[%s4396_s5 + $0xd0] sm:$0xff] }
 0x2c1   : > { %v1217_v45 = vpop.f32.mrf.mxu0  ;;  %v1309_v46 = vpop.f32.mrf.mxu1  ;;  %v1575_v52 = vrot.slane %v3789_v38, 1  ;;  %v3802_v53 = vmax.f32 %v1375_v22, 0.0  ;;  %v1568_v61 = vrot.slane %v3796_v40, 1  ;;  %v2622_v22 = vld [vmem:[%s4396_s5 + $0x528] sm:$0xff]  ;;  %v2047_v10 = vrot.slane %v3785_v20, 2 }
 0x2c2   : > { %v1327_v54 = vadd.f32 %v1217_v45, %v947_v51  ;;  %v3805_v62 = vmax.f32 %v1379_v43, 0.0  ;;  %v1378_v63 = vadd.f32 %v3753_v5, %v1325_v44  ;;  %v1329_v2 = vadd.f32 %v1309_v46, %v1039_v31  ;;  %v1443_v51 = vld [vmem:[%s4396_s5 + $0xd8] sm:$0xff] }
 0x2c3   : > { %v1219_v4 = vpop.f32.mrf.mxu0  ;;  %v1311_v8 = vpop.f32.mrf.mxu1  ;;  %v1576_v49 = vsel %vm632_vm4, %v1574_v47, %v1575_v52  ;;  %v1572_v56 = vrot.slane %v3802_v53, 1  ;;  %v3817_v58 = vmax.f32 %v1377_v41, 0.0  ;;  %v1440_v47 = vld [vmem:[%s4396_s5 + $0xc0] sm:$0xff] }
 0x2c4   : > { %v1328_v55 = vadd.f32 %v1219_v4, %v949_v32  ;;  %v1581_v12 = vrot.slane %v3805_v62, 1  ;;  %v3820_v23 = vmax.f32 %v1378_v63, 0.0  ;;  %v1382_v14 = vadd.f32 %v3745_v57, %v1329_v2  ;;  %2583 = vmatmul.mubr.msk.f32.vlgmr.msra.gmra.mxu1 %vm286_vm1, %v1576_v49  ;;  %v1438_v49 = vld [vmem:[%s4396_s5 + $0xb0] sm:$0xff] }
 0x2c5   : > { %v1223_v30 = vpop.f32.mrf.mxu0  ;;  %v1314_v25 = vpop.f32.mrf.mxu1  ;;  %v1380_v21 = vadd.f32 %v3749_v60, %v1327_v54  ;;  %1798 = vmatpush1.msra.mxu1 %v1446_v9  ;;  %1770 = vmatprep.mubr.f32.mxu1 %v2713_v0  ;;  %v1573_v17 = vsel %vm632_vm4, %v1571_v59, %v1572_v56  ;;  %v1577_v44 = vrot.slane %v3817_v58, 1  ;;  %v2620_v59 = vld [vmem:[%s4396_s5 + $0x518] sm:$0xff] }
 0x2c6   : > { %v1381_v26 = vadd.f32 %v3753_v5, %v1328_v55  ;;  %v1332_v28 = vadd.f32 %v1314_v25, %v1044_v1  ;;  %v3834_v31 = vmax.f32 %v1382_v14, 0.0  ;;  %1799 = vmatprep.subr.mxu1 %v1445_v7  ;;  %v1330_v32 = vadd.f32 %v1223_v30, %v953_v37  ;;  %1675 = vmatprep.mubr.f32.mxu0 %v1573_v17  ;;  %v2618_v7 = vld [vmem:[%s4396_s5 + $0x508] sm:$0xff]  ;;  %v1434_v17 = vld [vmem:[%s4396_s5 + $0x90] sm:$0xff] }
 0x2c7   : > { %v1225_v11 = vpop.f32.mrf.mxu0  ;;  %v1316_v18 = vpop.f32.mrf.mxu1  ;;  %v1582_v1 = vsel %vm632_vm4, %v1575_v52, %v1581_v12  ;;  %1800 = vmatpush1.msra.mxu1 %v1444_v36  ;;  %v1570_v37 = vsel %vm632_vm4, %v1568_v61, %v1569_v34  ;;  %v1579_v43 = vrot.slane %v3820_v23, 1  ;;  %v3868_v52 = vmax.f32 %v1380_v21, 0.0  ;;  %v1436_v61 = vld [vmem:[%s4396_s5 + $0xa0] sm:$0xff]  ;;  %v2616_v21 = vld [vmem:[%s4396_s5 + $0x4f8] sm:$0xff] }
 0x2c8   : > { %v3841_v13 = vmax.f32 %v1381_v26, 0.0  ;;  %v1385_v35 = vadd.f32 %v3745_v57, %v1332_v28  ;;  %v1331_v19 = vadd.f32 %v1225_v11, %v955_v29  ;;  %v1587_v41 = vrot.slane %v3834_v31, 1  ;;  %1676 = vmatmul.mubr.f32.vlgmr.msra.gmra.mxu0 %v1570_v37  ;;  %1801 = vmatprep.subr.mxu1 %v1443_v51  ;;  %v1441_v57 = vld [vmem:[%s4396_s5 + $0xc8] sm:$0xff]  ;;  %v2621_v29 = vld [vmem:[%s4396_s5 + $0x520] sm:$0xff]  ;;  %v1435_v26 = vld [vmem:[%s4396_s5 + $0x98] sm:$0xff] }
 0x2c9   : > { %2088 = vmatpush1.msra.mxu0 %v2623_v33  ;;  %2584 = vmatmul.mubr.msk.f32.gmra.mxu1 %vm286_vm1, %v1582_v1  ;;  %v1580_v54 = vsel %vm632_vm4, %v1572_v56, %v1579_v43  ;;  %v1383_v63 = vadd.f32 %v3749_v60, %v1330_v32  ;;  %v1578_v9 = vsel %vm632_vm4, %v1569_v34, %v1577_v44  ;;  %v2619_v60 = vld [vmem:[%s4396_s5 + $0x510] sm:$0xff]  ;;  %v1437_v34 = vld [vmem:[%s4396_s5 + $0xa8] sm:$0xff]  ;;  %v2617_v56 = vld [vmem:[%s4396_s5 + $0x500] sm:$0xff] }
 0x2ca   : > { %v1400_v45 = vmax.f32 %v1385_v35, 0.0  ;;  %v1384_v46 = vadd.f32 %v3753_v5, %v1331_v19  ;;  %1802 = vmatpush1.msra.mxu1 %v1442_v39  ;;  %2089 = vmatprep.subr.mxu0 %v2622_v22  ;;  %v1439_v5 = vld [vmem:[%s4396_s5 + $0xb8] sm:$0xff]  ;;  %v1585_v4 = vrot.slane %v3841_v13, 1  ;;  %v1588_v55 = vsel %vm632_vm4, %v1581_v12, %v1587_v41  ;;  %v2615_v28 = vld [vmem:[%s4396_s5 + $0x4f0] sm:$0xff]  ;;  %v2614_v11 = vld [vmem:[%s4396_s5 + $0x4e8] sm:$0xff] }
 0x2cb   : > { %1803 = vmatprep.subr.mxu1 %v1441_v57  ;;  %2090 = vmatpush1.msra.mxu0 %v2621_v29  ;;  %v1583_v12 = vrot.slane %v3868_v52, 1  ;;  %v1398_v14 = vmax.f32 %v1383_v63, 0.0  ;;  %v1433_v1 = vld [vmem:[%s4396_s5 + $0x88] sm:$0xff]  ;;  %v1432_v35 = vld [vmem:[%s4396_s5 + $0x80] sm:$0xff]  ;;  %v2612_v19 = vld [vmem:[%s4396_s5 + $0x4d8] sm:$0xff]  ;;  %v2048_v29 = vrot.slane %v3802_v53, 2 }
 0x2cc   : > { %v1399_v2 = vmax.f32 %v1384_v46, 0.0  ;;  %v3881_v8 = vsel %vm1348_vm7, %v1400_v45, 0.0  ;;  %1681 = vmatprep.mubr.f32.mxu0 %v1580_v54  ;;  %1804 = vmatpush1.msra.mxu1 %v1440_v47  ;;  %v1586_v36 = vsel %vm632_vm4, %v1579_v43, %v1585_v4  ;;  %v1431_v22 = vld [vmem:[%s4396_s5 + $0x78] sm:$0xff]  ;;  %v1430_v57 = vld [vmem:[%s4396_s5 + $0x70] sm:$0xff]  ;;  %v2610_v43 = vld [vmem:[%s4396_s5 + $0x4c8] sm:$0xff] }
 0x2cd   : > { %2091 = vmatprep.subr.mxu0 %v2620_v59  ;;  %1682 = vmatmul.mubr.f32.gmra.mxu0 %v1578_v9  ;;  %v1593_v30 = vrot.slane %v3881_v8, 1  ;;  %v1584_v32 = vsel %vm632_vm4, %v1577_v44, %v1583_v12  ;;  %v3932_v33 = vsel %vm1348_vm7, %v1398_v14, 0.0  ;;  %v1429_v44 = vld [vmem:[%s4396_s5 + $0x68] sm:$0xff]  ;;  %v2609_v45 = vld [vmem:[%s4396_s5 + $0x4c0] sm:$0xff]  ;;  %v2608_v47 = vld [vmem:[%s4396_s5 + $0x4b8] sm:$0xff]  ;;  %v2049_v20 = vsel %vm1099_vm3, %v2047_v10, %v2048_v29 }
 0x2ce   : > { %1776 = vmatprep.mubr.f32.mxu1 %v2713_v0  ;;  %1805 = vmatprep.subr.mxu1 %v1439_v5  ;;  %v3909_v25 = vsel %vm1348_vm7, %v1399_v2, 0.0  ;;  %v1589_v37 = vrot.slane %v3932_v33, 1  ;;  %v1428_v46 = vld [vmem:[%s4396_s5 + $0x60] sm:$0xff]  ;;  %v1427_v54 = vld [vmem:[%s4396_s5 + $0x58] sm:$0xff]  ;;  %v2607_v59 = vld [vmem:[%s4396_s5 + $0x4b0] sm:$0xff] }
 0x2cf   : > { %2092 = vmatpush1.msra.mxu0 %v2619_v60  ;;  %2585 = vmatmul.mubr.msk.f32.gmra.mxu1 %vm286_vm1, %v1588_v55  ;;  %v1591_v51 = vrot.slane %v3909_v25, 1  ;;  %v1594_v18 = vsel %vm632_vm4, %v1587_v41, %v1593_v30  ;;  %v2611_v41 = vld [vmem:[%s4396_s5 + $0x4d0] sm:$0xff]  ;;  %v2606_v2 = vld [vmem:[%s4396_s5 + $0x4a8] sm:$0xff]  ;;  %v1424_v9 = vld [vmem:[%s4396_s5 + $0x40] sm:$0xff] }
 0x2d0   : > { %1806 = vmatpush1.msra.mxu1 %v1438_v49  ;;  %2093 = vmatprep.subr.mxu0 %v2618_v7  ;;  %v1426_v63 = vld [vmem:[%s4396_s5 + $0x50] sm:$0xff]  ;;  %v1425_v5 = vld [vmem:[%s4396_s5 + $0x48] sm:$0xff]  ;;  %v2604_v60 = vld [vmem:[%s4396_s5 + $0x498] sm:$0xff] }
 0x2d1   : > { %1807 = vmatprep.subr.mxu1 %v1437_v34  ;;  %2094 = vmatpush1.msra.mxu0 %v2617_v56  ;;  %v1592_v39 = vsel %vm632_vm4, %v1585_v4, %v1591_v51  ;;  %v2605_v4 = vld [vmem:[%s4396_s5 + $0x4a0] sm:$0xff]  ;;  %v1423_v55 = vld [vmem:[%s4396_s5 + $0x38] sm:$0xff]  ;;  %v2603_v49 = vld [vmem:[%s4396_s5 + $0x490] sm:$0xff] }
 0x2d2   : > { %1687 = vmatprep.mubr.f32.mxu0 %v1586_v36  ;;  %1808 = vmatpush1.msra.mxu1 %v1436_v61  ;;  %v1422_v7 = vld [vmem:[%s4396_s5 + $0x30] sm:$0xff]  ;;  %v2602_v34 = vld [vmem:[%s4396_s5 + $0x488] sm:$0xff]  ;;  %v1420_v14 = vld [vmem:[%s4396_s5 + $0x20] sm:$0xff] }
 0x2d3   : > { %2095 = vmatprep.subr.mxu0 %v2616_v21  ;;  %1688 = vmatmul.mubr.f32.gmra.mxu0 %v1584_v32  ;;  %v1421_v56 = vld [vmem:[%s4396_s5 + $0x28] sm:$0xff]  ;;  %v2600_v30 = vld [vmem:[%s4396_s5 + $0x478] sm:$0xff]  ;;  %v2599_v61 = vld [vmem:[%s4396_s5 + $0x470] sm:$0xff] }
 0x2d4   : > { %1809 = vmatprep.subr.mxu1 %v1435_v26  ;;  %2096 = vmatpush1.msra.mxu0 %v2615_v28  ;;  %v1419_v36 = vld [vmem:[%s4396_s5 + $0x18] sm:$0xff]  ;;  %v1418_v21 = vld [vmem:[%s4396_s5 + $0x10] sm:$0xff]  ;;  %v2598_v26 = vld [vmem:[%s4396_s5 + $0x468] sm:$0xff] }
 0x2d5   : > { %1782 = vmatprep.mubr.f32.mxu1 %v2713_v0  ;;  %1810 = vmatpush1.msra.mxu1 %v1434_v17  ;;  %v1417_v28 = vld [vmem:[%s4396_s5 + $0x8] sm:$0xff]  ;;  %v2597_v51 = vld [vmem:[%s4396_s5 + $0x460] sm:$0xff]  ;;  %v2596_v17 = vld [vmem:[%s4396_s5 + $0x458] sm:$0xff] }
 0x2d6   : > { %2097 = vmatprep.subr.mxu0 %v2614_v11  ;;  %2586 = vmatmul.mubr.msk.f32.gmra.mxu1 %vm286_vm1, %v1594_v18  ;;  %v1416_v32 = vld [vmem:[%s4396_s5] sm:$0xff]  ;;  %v1479_v11 = vld [vmem:[%s4396_s5 + $0x1f8] sm:$0xff]  ;;  %v2595_v18 = vld [vmem:[%s4396_s5 + $0x450] sm:$0xff] }
 0x2d7   : > { %1811 = vmatprep.subr.mxu1 %v1433_v1  ;;  %2098 = vmatpush1.msra.mxu0 %v2613_v3  ;;  %v1478_v1 = vld [vmem:[%s4396_s5 + $0x1f0] sm:$0xff]  ;;  %v2594_v3 = vld [vmem:[%s4396_s5 + $0x448] sm:$0xff]  ;;  %v2653_v10 = vld [vmem:[%s4396_s5 + $0x620] sm:$0xff] }
 0x2d8   : > { %1812 = vmatpush1.msra.mxu1 %v1432_v35  ;;  %2587 = vmatprep.mubr.msk.f32.mxu1 %vm1339_vm6, %v1387_v27  ;;  %v1590_v27 = vsel %vm632_vm4, %v1583_v12, %v1589_v37  ;;  %v2601_v12 = vld [vmem:[%s4396_s5 + $0x480] sm:$0xff]  ;;  %v1477_v35 = vld [vmem:[%s4396_s5 + $0x1e8] sm:$0xff] }
 0x2d9   : > { %2099 = vmatprep.subr.mxu0 %v2612_v19  ;;  %1693 = vmatprep.mubr.f32.mxu0 %v1592_v39  ;;  %v2593_v37 = vld [vmem:[%s4396_s5 + $0x440] sm:$0xff]  ;;  %v2656_v39 = vld [vmem:[%s4396_s5 + $0x638] sm:$0xff] }
 0x2da   : > { %1813 = vmatprep.subr.mxu1 %v1431_v22  ;;  %2100 = vmatpush1.msra.mxu0 %v2611_v41  ;;  %v1476_v19 = vld [vmem:[%s4396_s5 + $0x1e0] sm:$0xff]  ;;  %v1475_v22 = vld [vmem:[%s4396_s5 + $0x1d8] sm:$0xff]  ;;  %v2655_v41 = vld [vmem:[%s4396_s5 + $0x630] sm:$0xff] }
 0x2db   : > { %1694 = vmatmul.mubr.f32.gmra.mxu0 %v1590_v27  ;;  %1814 = vmatpush1.msra.mxu1 %v1430_v57  ;;  %v1474_v57 = vld [vmem:[%s4396_s5 + $0x1d0] sm:$0xff]  ;;  %v1472_v27 = vld [vmem:[%s4396_s5 + $0x1c0] sm:$0xff] }
 0x2dc   : > { %2101 = vmatprep.subr.mxu0 %v2610_v43  ;;  %1815 = vmatprep.subr.mxu1 %v1429_v44  ;;  %v2654_v43 = vld [vmem:[%s4396_s5 + $0x628] sm:$0xff] }
 0x2dd   : > { %2102 = vmatpush1.msra.mxu0 %v2609_v45  ;;  %2151 = vmatprep.mubr.f32.mxu0 %v2049_v20  ;;  %v1473_v44 = vld [vmem:[%s4396_s5 + $0x1c8] sm:$0xff]  ;;  %v2652_v45 = vld [vmem:[%s4396_s5 + $0x618] sm:$0xff]  ;;  %v1470_v20 = vld [vmem:[%s4396_s5 + $0x1b0] sm:$0xff] }
 0x2de   : > { %1816 = vmatpush1.msra.mxu1 %v1428_v46  ;;  %2103 = vmatprep.subr.mxu0 %v2608_v47  ;;  %v1471_v46 = vld [vmem:[%s4396_s5 + $0x1b8] sm:$0xff]  ;;  %v2651_v47 = vld [vmem:[%s4396_s5 + $0x610] sm:$0xff] }
 0x2df   : > { %1817 = vmatprep.subr.mxu1 %v1427_v54  ;;  %2104 = vmatpush1.msra.mxu0 %v2607_v59  ;;  %v2650_v54 = vld [vmem:[%s4396_s5 + $0x608] sm:$0xff] }
 0x2e0   : > { %1818 = vmatpush1.msra.mxu1 %v1426_v63  ;;  %2105 = vmatprep.subr.mxu0 %v2606_v2  ;;  %v1469_v59 = vld [vmem:[%s4396_s5 + $0x1a8] sm:$0xff]  ;;  %v2649_v63 = vld [vmem:[%s4396_s5 + $0x600] sm:$0xff] }
 0x2e1   : > { %1819 = vmatprep.subr.mxu1 %v1425_v5  ;;  %2106 = vmatpush1.msra.mxu0 %v2605_v4  ;;  %v1468_v2 = vld [vmem:[%s4396_s5 + $0x1a0] sm:$0xff]  ;;  %v2648_v5 = vld [vmem:[%s4396_s5 + $0x5f8] sm:$0xff] }
 0x2e2   : > { %1820 = vmatpush1.msra.mxu1 %v1424_v9  ;;  %2107 = vmatprep.subr.mxu0 %v2604_v60  ;;  %v1467_v4 = vld [vmem:[%s4396_s5 + $0x198] sm:$0xff]  ;;  %v2647_v9 = vld [vmem:[%s4396_s5 + $0x5f0] sm:$0xff] }
 0x2e3   : > { %1821 = vmatprep.subr.mxu1 %v1423_v55  ;;  %2108 = vmatpush1.msra.mxu0 %v2603_v49  ;;  %v1466_v60 = vld [vmem:[%s4396_s5 + $0x190] sm:$0xff]  ;;  %v2646_v55 = vld [vmem:[%s4396_s5 + $0x5e8] sm:$0xff] }
 0x2e4   : > { %1822 = vmatpush1.msra.mxu1 %v1422_v7  ;;  %2109 = vmatprep.subr.mxu0 %v2602_v34  ;;  %v1465_v49 = vld [vmem:[%s4396_s5 + $0x188] sm:$0xff]  ;;  %v2645_v7 = vld [vmem:[%s4396_s5 + $0x5e0] sm:$0xff] }
 0x2e5   : > { %1823 = vmatprep.subr.mxu1 %v1421_v56  ;;  %2110 = vmatpush1.msra.mxu0 %v2601_v12  ;;  %v1464_v34 = vld [vmem:[%s4396_s5 + $0x180] sm:$0xff]  ;;  %v2644_v56 = vld [vmem:[%s4396_s5 + $0x5d8] sm:$0xff] }
 0x2e6   : > { %1824 = vmatpush1.msra.mxu1 %v1420_v14  ;;  %2111 = vmatprep.subr.mxu0 %v2600_v30  ;;  %v1463_v12 = vld [vmem:[%s4396_s5 + $0x178] sm:$0xff]  ;;  %v2643_v14 = vld [vmem:[%s4396_s5 + $0x5d0] sm:$0xff] }
 0x2e7   : > { %1825 = vmatprep.subr.mxu1 %v1419_v36  ;;  %2112 = vmatpush1.msra.mxu0 %v2599_v61  ;;  %v1462_v30 = vld [vmem:[%s4396_s5 + $0x170] sm:$0xff]  ;;  %v2642_v36 = vld [vmem:[%s4396_s5 + $0x5c8] sm:$0xff] }
 0x2e8   : > { %1826 = vmatpush1.msra.mxu1 %v1418_v21  ;;  %2113 = vmatprep.subr.mxu0 %v2598_v26  ;;  %v1461_v61 = vld [vmem:[%s4396_s5 + $0x168] sm:$0xff]  ;;  %v2641_v21 = vld [vmem:[%s4396_s5 + $0x5c0] sm:$0xff] }
 0x2e9   : > { %1827 = vmatprep.subr.mxu1 %v1417_v28  ;;  %2114 = vmatpush1.msra.mxu0 %v2597_v51  ;;  %v1460_v26 = vld [vmem:[%s4396_s5 + $0x160] sm:$0xff]  ;;  %v2640_v28 = vld [vmem:[%s4396_s5 + $0x5b8] sm:$0xff] }
 0x2ea   : > { %1828 = vmatpush1.msra.mxu1 %v1416_v32  ;;  %2115 = vmatprep.subr.mxu0 %v2596_v17  ;;  %v1459_v51 = vld [vmem:[%s4396_s5 + $0x158] sm:$0xff]  ;;  %v2639_v32 = vld [vmem:[%s4396_s5 + $0x5b0] sm:$0xff] }
 0x2eb   : > { %1829 = vmatprep.subr.mxu1 %v1479_v11  ;;  %2116 = vmatpush1.msra.mxu0 %v2595_v18  ;;  %v1458_v17 = vld [vmem:[%s4396_s5 + $0x150] sm:$0xff]  ;;  %v2638_v11 = vld [vmem:[%s4396_s5 + $0x5a8] sm:$0xff] }
 0x2ec   : > { %1830 = vmatpush2.msra.mxu1 %v1478_v1  ;;  %2117 = vmatprep.subr.mxu0 %v2594_v3  ;;  %v1457_v18 = vld [vmem:[%s4396_s5 + $0x148] sm:$0xff]  ;;  %v2637_v1 = vld [vmem:[%s4396_s5 + $0x5a0] sm:$0xff] }
 0x2ed   : > { %1831 = vmatprep.subr.mxu1 %v1477_v35  ;;  %2118 = vmatpush1.msra.mxu0 %v2593_v37  ;;  %v1456_v3 = vld [vmem:[%s4396_s5 + $0x140] sm:$0xff]  ;;  %v2636_v35 = vld [vmem:[%s4396_s5 + $0x598] sm:$0xff] }
 0x2ee   : > { %1832 = vmatpush2.msra.mxu1 %v1476_v19  ;;  %2119 = vmatprep.subr.mxu0 %v2656_v39  ;;  %v1455_v37 = vld [vmem:[%s4396_s5 + $0x138] sm:$0xff]  ;;  %v2635_v19 = vld [vmem:[%s4396_s5 + $0x590] sm:$0xff] }
 0x2ef   : > { %1833 = vmatprep.subr.mxu1 %v1475_v22  ;;  %2120 = vmatpush2.msra.mxu0 %v2655_v41  ;;  %v1454_v39 = vld [vmem:[%s4396_s5 + $0x130] sm:$0xff]  ;;  %v2634_v22 = vld [vmem:[%s4396_s5 + $0x588] sm:$0xff] }
 0x2f0   : > { %1834 = vmatpush2.msra.mxu1 %v1474_v57  ;;  %2121 = vmatprep.subr.mxu0 %v2654_v43  ;;  %v1453_v41 = vld [vmem:[%s4396_s5 + $0x128] sm:$0xff]  ;;  %v2633_v57 = vld [vmem:[%s4396_s5 + $0x580] sm:$0xff] }
 0x2f1   : > { %1835 = vmatprep.subr.mxu1 %v1473_v44  ;;  %2122 = vmatpush2.msra.mxu0 %v2653_v10  ;;  %v1452_v43 = vld [vmem:[%s4396_s5 + $0x120] sm:$0xff]  ;;  %v2632_v44 = vld [vmem:[%s4396_s5 + $0x578] sm:$0xff] }
 0x2f2   : > { %1836 = vmatpush2.msra.mxu1 %v1472_v27  ;;  %2123 = vmatprep.subr.mxu0 %v2652_v45  ;;  %v1451_v10 = vld [vmem:[%s4396_s5 + $0x118] sm:$0xff]  ;;  %v2631_v27 = vld [vmem:[%s4396_s5 + $0x570] sm:$0xff] }
 0x2f3   : > { %1837 = vmatprep.subr.mxu1 %v1471_v46  ;;  %2124 = vmatpush2.msra.mxu0 %v2651_v47  ;;  %v1450_v45 = vld [vmem:[%s4396_s5 + $0x110] sm:$0xff]  ;;  %v2630_v46 = vld [vmem:[%s4396_s5 + $0x568] sm:$0xff] }
 0x2f4   : > { %1838 = vmatpush2.msra.mxu1 %v1470_v20  ;;  %2125 = vmatprep.subr.mxu0 %v2650_v54  ;;  %v1449_v47 = vld [vmem:[%s4396_s5 + $0x108] sm:$0xff]  ;;  %v2629_v20 = vld [vmem:[%s4396_s5 + $0x560] sm:$0xff] }
 0x2f5   : > { %1839 = vmatprep.subr.mxu1 %v1469_v59  ;;  %2126 = vmatpush2.msra.mxu0 %v2649_v63  ;;  %v1448_v54 = vld [vmem:[%s4396_s5 + $0x100] sm:$0xff]  ;;  %v2628_v59 = vld [vmem:[%s4396_s5 + $0x558] sm:$0xff] }
 0x2f6   : > { %1840 = vmatpush2.msra.mxu1 %v1468_v2  ;;  %2127 = vmatprep.subr.mxu0 %v2648_v5  ;;  %v1483_v63 = vld [vmem:[%s4396_s5 + $0x218] sm:$0xff]  ;;  %v2627_v2 = vld [vmem:[%s4396_s5 + $0x550] sm:$0xff]  ;;  %v2045_v5 = vrot.slane %v3787_v15, 2 }
 0x2f7   : > { %1841 = vmatprep.subr.mxu1 %v1467_v4  ;;  %2128 = vmatpush2.msra.mxu0 %v2647_v9  ;;  %v1482_v4 = vld [vmem:[%s4396_s5 + $0x210] sm:$0xff]  ;;  %v2626_v9 = vld [vmem:[%s4396_s5 + $0x548] sm:$0xff] }
 0x2f8   : > { %1842 = vmatpush2.msra.mxu1 %v1466_v60  ;;  %2129 = vmatprep.subr.mxu0 %v2646_v55  ;;  %v2625_v60 = vld [vmem:[%s4396_s5 + $0x540] sm:$0xff]  ;;  %v2055_v55 = vrot.slane %v3820_v23, 2 }
 0x2f9   : > { %1843 = vmatprep.subr.mxu1 %v1465_v49  ;;  %2130 = vmatpush2.msra.mxu0 %v2645_v7  ;;  %v1481_v49 = vld [vmem:[%s4396_s5 + $0x208] sm:$0xff]  ;;  %v2044_v7 = vrot.slane %v3796_v40, 2 }
 0x2fa   : > { %1844 = vmatpush2.msra.mxu1 %v1464_v34  ;;  %2131 = vmatprep.subr.mxu0 %v2644_v56  ;;  %v1480_v34 = vld [vmem:[%s4396_s5 + $0x200] sm:$0xff]  ;;  %v2056_v40 = vsel %vm1099_vm3, %v2048_v29, %v2055_v55  ;;  %v2061_v56 = vrot.slane %v3841_v13, 2  ;;  %v2065_v29 = vrot.slane %v3932_v33, 2  ;;  %v2051_v33 = vrot.slane %v3789_v38, 2 }
 0x2fb   : > { %1845 = vmatprep.subr.mxu1 %v1463_v12  ;;  %2132 = vmatpush2.msra.mxu0 %v2643_v14  ;;  %v2046_v6 = vsel %vm1099_vm3, %v2044_v7, %v2045_v5  ;;  %v2660_v12 = vld [vmem:[%s4396_s5 + $0x658] sm:$0xff] }
 0x2fc   : > { %1846 = vmatpush2.msra.mxu1 %v1462_v30  ;;  %2133 = vmatprep.subr.mxu0 %v2642_v36  ;;  %v2059_v30 = vrot.slane %v3868_v52, 2 }
 0x2fd   : > { %1847 = vmatprep.subr.mxu1 %v1461_v61  ;;  %2134 = vmatpush2.msra.mxu0 %v2641_v21  ;;  %v2050_v61 = vrot.slane %v3779_v42, 2  ;;  %v2057_v21 = vrot.slane %v3805_v62, 2 }
 0x2fe   : > { %1848 = vmatpush2.msra.mxu1 %v1460_v26  ;;  %2135 = vmatprep.subr.mxu0 %v2640_v28  ;;  %v2063_v28 = vrot.slane %v3834_v31, 2 }
 0x2ff   : > { %1849 = vmatprep.subr.mxu1 %v1459_v51  ;;  %2136 = vmatpush2.msra.mxu0 %v2639_v32  ;;  %v2052_v26 = vsel %vm1099_vm3, %v2050_v61, %v2051_v33  ;;  %v2058_v51 = vsel %vm1099_vm3, %v2051_v33, %v2057_v21 }
 0x300   : > { %1850 = vmatpush2.msra.mxu1 %v1458_v17  ;;  %2137 = vmatprep.subr.mxu0 %v2638_v11 }
 0x301   : > { %1851 = vmatprep.subr.mxu1 %v1457_v18  ;;  %2138 = vmatpush2.msra.mxu0 %v2637_v1 }
 0x302   : > { %1852 = vmatpush2.msra.mxu1 %v1456_v3  ;;  %2139 = vmatprep.subr.mxu0 %v2636_v35 }
 0x303   : > { %1853 = vmatprep.subr.mxu1 %v1455_v37  ;;  %2140 = vmatpush2.msra.mxu0 %v2635_v19 }
 0x304   : > { %1854 = vmatpush2.msra.mxu1 %v1454_v39  ;;  %2141 = vmatprep.subr.mxu0 %v2634_v22 }
 0x305   : > { %1855 = vmatprep.subr.mxu1 %v1453_v41  ;;  %2142 = vmatpush2.msra.mxu0 %v2633_v57 }
 0x306   : > { %1856 = vmatpush2.msra.mxu1 %v1452_v43  ;;  %2143 = vmatprep.subr.mxu0 %v2632_v44 }
 0x307   : > { %1857 = vmatprep.subr.mxu1 %v1451_v10  ;;  %2144 = vmatpush2.msra.mxu0 %v2631_v27 }
 0x308   : > { %1858 = vmatpush2.msra.mxu1 %v1450_v45  ;;  %2145 = vmatprep.subr.mxu0 %v2630_v46 }
 0x309   : > { %1859 = vmatprep.subr.mxu1 %v1449_v47  ;;  %2146 = vmatpush2.msra.mxu0 %v2629_v20 }
 0x30a   : > { %1860 = vmatpush2.msra.mxu1 %v1448_v54  ;;  %2147 = vmatprep.subr.mxu0 %v2628_v59 }
 0x30b   : > { %2588 = vmatmul.mubr.msk.f32.vlgmr.msra.gmra.mxu1 %vm1339_vm6, %v1386_v16  ;;  %1914 = vmatprep.subr.mxu1 %v1483_v63  ;;  %v2053_v16 = vrot.slane %v3817_v58, 2 }
 0x30c   : > { %2148 = vmatpush2.msra.mxu0 %v2627_v2  ;;  %1867 = vmatprep.mubr.f32.mxu1 %v3802_v53  ;;  %v2062_v53 = vsel %vm1099_vm3, %v2055_v55, %v2061_v56 }
 0x30d   : > { %1915 = vmatpush1.msra.mxu1 %v1482_v4  ;;  %2149 = vmatprep.subr.mxu0 %v2626_v9  ;;  %v2054_v14 = vsel %vm1099_vm3, %v2045_v5, %v2053_v16 }
 0x30e   : > { %2150 = vmatpush2.msra.mxu0 %v2625_v60  ;;  %1916 = vmatprep.subr.mxu1 %v1481_v49 }
 0x30f   : > { %2152 = vmatmul.mubr.f32.vlgmr.msra.gmra.mxu0 %v2046_v6  ;;  %1868 = vmatmul.mubr.f32.gmra.mxu1 %v3787_v15  ;;  %v2067_v15 = vrot.slane %v3909_v25, 2  ;;  %v2066_v25 = vsel %vm1099_vm3, %v2059_v30, %v2065_v29  ;;  %v2273_v6 = vld [vmem:[%s4397_s6] sm:$0x3] }
 0x310   : > { %2157 = vmatprep.mubr.f32.mxu0 %v2056_v40  ;;  %1873 = vmatprep.mubr.f32.mxu1 %v3820_v23  ;;  %v2060_v23 = vsel %vm1099_vm3, %v2053_v16, %v2059_v30 }
 0x311   : > { %1917 = vmatpush1.msra.mxu1 %v1480_v34  ;;  %v2068_v36 = vsel %vm1099_vm3, %v2061_v56, %v2067_v15 }
 0x312   : > { %2204 = vmatprep.subr.mxu1 %v2660_v12 }
 0x313   : > { %2158 = vmatmul.mubr.f32.gmra.mxu0 %v2054_v14  ;;  %1874 = vmatmul.mubr.f32.gmra.mxu1 %v3817_v58  ;;  %v2659_v58 = vld [vmem:[%s4396_s5 + $0x650] sm:$0xff]  ;;  %v4356_v14 = vrot.slane %v2273_v6, %v1358_v48 }
 0x314   : > { %2163 = vmatprep.mubr.f32.mxu0 %v2062_v53  ;;  %1879 = vmatprep.mubr.f32.mxu1 %v3841_v13  ;;  %v2658_v13 = vld [vmem:[%s4396_s5 + $0x648] sm:$0xff] }
 0x317   : > { %2164 = vmatmul.mubr.f32.gmra.mxu0 %v2060_v23  ;;  %1880 = vmatmul.mubr.f32.gmra.mxu1 %v3868_v52  ;;  %v2657_v52 = vld [vmem:[%s4396_s5 + $0x640] sm:$0xff] }
 0x318   : > { %2169 = vmatprep.mubr.f32.mxu0 %v2068_v36  ;;  %1950 = vmatprep.mubr.f32.mxu1 %v2713_v0 }
 0x31b   : > { %2170 = vmatmul.mubr.f32.gmra.mxu0 %v2066_v25  ;;  %2589 = vmatmul.mubr.msk.f32.vlgmr.msra.gmra.mxu1 %vm286_vm1, %v3779_v42  ;;  %v2069_v42 = vrot.slane %v3881_v8, 2  ;;  %v4360_v25 = vrot.slane %v2273_v6, %v1362_v50 }
 0x31c   : > { %2205 = vmatpush1.msra.mxu1 %v2659_v58  ;;  %1956 = vmatprep.mubr.f32.mxu1 %v2713_v0 }
 0x31d   : > { %2206 = vmatprep.subr.mxu1 %v2658_v13 }
 0x31e   : > { %2207 = vmatpush1.msra.mxu1 %v2657_v52 }
 0x31f   : > { %2590 = vmatmul.mubr.msk.f32.gmra.mxu1 %vm286_vm1, %v3789_v38  ;;  %v2064_v38 = vsel %vm1099_vm3, %v2057_v21, %v2063_v28 }
 0x320   : > { %1962 = vmatprep.mubr.f32.mxu1 %v2713_v0 }
 0x323   : > { %2591 = vmatmul.mubr.msk.f32.gmra.mxu1 %vm286_vm1, %v3805_v62  ;;  %v2070_v62 = vsel %vm1099_vm3, %v2063_v28, %v2069_v42 }
 0x324   : > { %1968 = vmatprep.mubr.f32.mxu1 %v2713_v0 }
 0x327   : > { %2592 = vmatmul.mubr.msk.f32.gmra.mxu1 %vm286_vm1, %v3834_v31 }
 0x328   : > { %2240 = vmatprep.mubr.f32.mxu1 %v2713_v0 }
 0x32b   : > { %2661 = vmatmul.mubr.msk.f32.vlgmr.msra.gmra.mxu1 %vm286_vm1, %v2052_v26 }
 0x32c   : > { %2246 = vmatprep.mubr.f32.mxu1 %v2713_v0 }
 0x32f   : > { %2662 = vmatmul.mubr.msk.f32.gmra.mxu1 %vm286_vm1, %v2058_v51 }
 0x330   : > { %2252 = vmatprep.mubr.f32.mxu1 %v2713_v0 }
 0x333   : > { %2663 = vmatmul.mubr.msk.f32.gmra.mxu1 %vm286_vm1, %v2064_v38 }
 0x334   : > { %2258 = vmatprep.mubr.f32.mxu1 %v2713_v0 }
 0x337   : > { %2664 = vmatmul.mubr.msk.f32.gmra.mxu1 %vm286_vm1, %v2070_v62 }
 0x384   : > { %v1766_v32 = vpop.f32.mrf.mxu1 }
 0x386   : > { %v1768_v31 = vpop.f32.mrf.mxu1 }
 0x388   : > { %v1677_v1 = vpop.f32.mrf.mxu0 }
 0x389   : > { %v1772_v17 = vpop.f32.mrf.mxu1  ;;  %v1767_v7 = vadd.f32 %v1766_v32, %v1677_v1 }
 0x38a   : > { %v1679_v35 = vpop.f32.mrf.mxu0 }
 0x38b   : > { %v1774_v11 = vpop.f32.mrf.mxu1  ;;  %v1769_v40 = vadd.f32 %v1768_v31, %v1679_v35 }
 0x38d   : > { %v1683_v8 = vpop.f32.mrf.mxu0 }
 0x38e   : > { %v1773_v30 = vadd.f32 %v1772_v17, %v1683_v8 }
 0x38f   : > { %v1778_v18 = vpop.f32.mrf.mxu1  ;;  %v1685_v39 = vpop.f32.mrf.mxu0 }
 0x390   : > { %v1775_v23 = vadd.f32 %v1774_v11, %v1685_v39 }
 0x391   : > { %v1780_v3 = vpop.f32.mrf.mxu1 }
 0x393   : > { %v1689_v41 = vpop.f32.mrf.mxu0 }
 0x394   : > { %v1779_v21 = vadd.f32 %v1778_v18, %v1689_v41 }
 0x395   : > { %v1691_v44 = vpop.f32.mrf.mxu0 }
 0x396   : > { %v4343_v37 = vpop.f32.mrf.mxu1  ;;  %v1781_v24 = vadd.f32 %v1780_v3, %v1691_v44 }
 0x398   : > { %v4345_v19 = vpop.f32.mrf.mxu1 }
 0x39b   : > { %v1695_v45 = vpop.f32.mrf.mxu0 }
 0x39c   : > { %v1785_v35 = vadd.f32 %v4343_v37, %v1695_v45 }
 0x39d   : > { %v1697_v20 = vpop.f32.mrf.mxu0 }
 0x3cb   : > { %v1863_v22 = vpop.f32.mrf.mxu1 }
 0x3cc   : > { %v1864_v56 = vadd.f32 %v1863_v22, %v1767_v7 }
 0x3cd   : > { %v1865_v0 = vpop.f32.mrf.mxu1 }
 0x3ce   : > { %v1866_v15 = vadd.f32 %v1865_v0, %v1769_v40 }
 0x3cf   : > { %v1869_v57 = vpop.f32.mrf.mxu1  ;;  %v2153_v59 = vpop.f32.mrf.mxu0 }
 0x3d0   : > { %v1870_v13 = vadd.f32 %v1869_v57, %v1773_v30 }
 0x3d1   : > { %v1871_v43 = vpop.f32.mrf.mxu1  ;;  %v2155_v5 = vpop.f32.mrf.mxu0 }
 0x3d2   : > { %v1872_v26 = vadd.f32 %v1871_v43, %v1775_v23  ;;  %v1787_v43 = vadd.f32 %v4345_v19, %v1697_v20 }
 0x3d3   : > { %v1875_v10 = vpop.f32.mrf.mxu1  ;;  %v2159_v60 = vpop.f32.mrf.mxu0 }
 0x3d4   : > { %v1876_v50 = vadd.f32 %v1875_v10, %v1779_v21 }
 0x3d5   : > { %v1877_v27 = vpop.f32.mrf.mxu1  ;;  %v2161_v16 = vpop.f32.mrf.mxu0 }
 0x3d6   : > { %v1878_v8 = vadd.f32 %v1877_v27, %v1781_v24 }
 0x3d7   : > { %v1881_v46 = vpop.f32.mrf.mxu1  ;;  %v2165_v36 = vpop.f32.mrf.mxu0 }
 0x3d8   : > { %v1882_v44 = vadd.f32 %v1881_v46, %v1785_v35 }
 0x3d9   : > { %v4347_v47 = vpop.f32.mrf.mxu1  ;;  %v2167_v62 = vpop.f32.mrf.mxu0 }
 0x3db   : > { %v1952_v54 = vpop.f32.mrf.mxu1  ;;  %v2171_v10 = vpop.f32.mrf.mxu0 }
 0x3dc   : > { %v1953_v53 = vadd.f32 %v1952_v54, %v1864_v56 }
 0x3dd   : > { %v1954_v63 = vpop.f32.mrf.mxu1 }
 0x3de   : > { %v1955_v52 = vadd.f32 %v1954_v63, %v1866_v15 }
 0x3df   : > { %v1958_v2 = vpop.f32.mrf.mxu1 }
 0x3e0   : > { %v1959_v28 = vadd.f32 %v1958_v2, %v1870_v13  ;;  %v1884_v2 = vadd.f32 %v4347_v47, %v1787_v43 }
 0x3e1   : > { %v1960_v4 = vpop.f32.mrf.mxu1 }
 0x3e2   : > { %v1961_v32 = vadd.f32 %v1960_v4, %v1872_v26 }
 0x3e3   : > { %v1964_v9 = vpop.f32.mrf.mxu1 }
 0x3e4   : > { %v1965_v39 = vadd.f32 %v1964_v9, %v1876_v50 }
 0x3e5   : > { %v1966_v55 = vpop.f32.mrf.mxu1 }
 0x3e6   : > { %v1967_v54 = vadd.f32 %v1966_v55, %v1878_v8 }
 0x3e7   : > { %v1970_v49 = vpop.f32.mrf.mxu1 }
 0x3e9   : > { %v4352_v34 = vpop.f32.mrf.mxu1 }
 0x3ea   : > { %v1973_v55 = vadd.f32 %v4352_v34, %v1884_v2 }
 0x3eb   : > { %v2242_v12 = vpop.f32.mrf.mxu1 }
 0x3ec   : > { %v2243_v29 = vadd.f32 %v2242_v12, %v2153_v59 }
 0x3ed   : > { %v2244_v58 = vpop.f32.mrf.mxu1 }
 0x3ee   : > { %v2265_v33 = vadd.f32 %v2243_v29, %v1953_v53  ;;  %v2245_v61 = vadd.f32 %v2244_v58, %v2155_v5  ;;  %v1971_v5 = vadd.f32 %v1970_v49, %v1882_v44 }
 0x3ef   : > { %v2248_v48 = vpop.f32.mrf.mxu1 }
 0x3f0   : > { %v2285_v51 = vadd.f32 %v4356_v14, %v2265_v33  ;;  %v2266_v42 = vadd.f32 %v2245_v61, %v1955_v52  ;;  %v2249_v38 = vadd.f32 %v2248_v48, %v2159_v60  ;;  %v2173_v60 = vpop.f32.mrf.mxu0 }
 0x3f1   : > { %v2250_v31 = vpop.f32.mrf.mxu1 }
 0x3f2   : > { %v2293_v17 = vmax.f32 %v2285_v51, 0.0  ;;  %v2286_v11 = vadd.f32 %v4360_v25, %v2266_v42  ;;  %v2267_v18 = vadd.f32 %v2249_v38, %v1959_v28  ;;  %v2251_v1 = vadd.f32 %v2250_v31, %v2161_v16 }
 0x3f3   : > { %v2254_v22 = vpop.f32.mrf.mxu1 }
 0x3f4   : > { %2301 = vst [vmem:[%s4367_s14] sm:$0xff] %v2293_v17  ;;  %v2294_v0 = vmax.f32 %v2286_v11, 0.0  ;;  %v2287_v41 = vadd.f32 %v4356_v14, %v2267_v18  ;;  %v2268_v3 = vadd.f32 %v2251_v1, %v1961_v32  ;;  %v2255_v57 = vadd.f32 %v2254_v22, %v2165_v36 }
 0x3f5   : > { %v2256_v59 = vpop.f32.mrf.mxu1 }
 0x3f6   : > { %2302 = vst [vmem:[%s4367_s14 + $0x8] sm:$0xff] %v2294_v0  ;;  %v2295_v63 = vmax.f32 %v2287_v41, 0.0  ;;  %v2288_v37 = vadd.f32 %v4360_v25, %v2268_v3  ;;  %v2269_v27 = vadd.f32 %v2255_v57, %v1965_v39  ;;  %v2257_v45 = vadd.f32 %v2256_v59, %v2167_v62 }
 0x3f7   : > { %v2260_v4 = vpop.f32.mrf.mxu1 }
 0x3f8   : > { %2303 = vst [vmem:[%s4367_s14 + $0x10] sm:$0xff] %v2295_v63  ;;  %v2296_v9 = vmax.f32 %v2288_v37, 0.0  ;;  %v2289_v19 = vadd.f32 %v4356_v14, %v2269_v27  ;;  %v2270_v46 = vadd.f32 %v2257_v45, %v1967_v54  ;;  %v2261_v20 = vadd.f32 %v2260_v4, %v2171_v10 }
 0x3f9   : > { %v2262_v7 = vpop.f32.mrf.mxu1 }
 0x3fa   : > { %2304 = vst [vmem:[%s4367_s14 + $0x18] sm:$0xff] %v2296_v9  ;;  %v2297_v6 = vmax.f32 %v2289_v19, 0.0  ;;  %v2290_v47 = vadd.f32 %v4360_v25, %v2270_v46  ;;  %v2271_v16 = vadd.f32 %v2261_v20, %v1971_v5  ;;  %v2263_v49 = vadd.f32 %v2262_v7, %v2173_v60 }
 0x3fc   : > { %2305 = vst [vmem:[%s4367_s14 + $0x20] sm:$0xff] %v2297_v6  ;;  %v2298_v40 = vmax.f32 %v2290_v47, 0.0  ;;  %v2291_v56 = vadd.f32 %v4356_v14, %v2271_v16  ;;  %v2272_v12 = vadd.f32 %v2263_v49, %v1973_v55 }
 0x3fe   : > { %2306 = vst [vmem:[%s4367_s14 + $0x28] sm:$0xff] %v2298_v40  ;;  %v2299_v30 = vmax.f32 %v2291_v56, 0.0  ;;  %v2292_v15 = vadd.f32 %v4360_v25, %v2272_v12 }
 0x400   : > { %2307 = vst [vmem:[%s4367_s14 + $0x30] sm:$0xff] %v2299_v30  ;;  %v2300_v53 = vmax.f32 %v2292_v15, 0.0 }
 0x402   : > { %2308 = vst [vmem:[%s4367_s14 + $0x38] sm:$0xff] %v2300_v53 }
 0x403 PF: > { %s17_s24 = sadd.s32 1, %s2711_s24  }
 0x404   : > { %p14_p4 = scmp.ge.s32.totalorder %s17_s24, 4  }
 0x406   :  { %16 = sbr.rel (!%p14_p4) target bundleno = 1 (0x1), region = 82 }

</bundles_post_ra>
